<compile_context>
chip_gen: v6e
topology: v6e:2x2x1
jax: 0.10.0
libtpu: 0.0.40
codegen_flags: <defaults>
</compile_context>

<pallas_src>
import numpy as np
import jax
import jax.numpy as jnp
from jax.experimental import pallas as pl
from jax.experimental.pallas import tpu as pltpu

BN_EPS = 1e-5
BAYES_NAMES = ("lin_w", "lin_b", "c1_w", "c1_b", "c2_w", "c2_b", "c3_w", "c3_b")


# ----------------------------------------------------------------------------
# Pallas kernel: linear -> convT(2,2) -> BN -> relu -> convT(4,4) -> BN -> relu
#                -> convT(4,4) -> sigmoid
# ----------------------------------------------------------------------------
def _make_kernel(nb_real):
    """Build the fused forward kernel for a given (static) real batch size."""
    f32 = jnp.float32
    bf16 = jnp.bfloat16

    def kernel(
        x_ref,                      # (Bp, Din)              f32
        w1t_ref, b1_ref,            # (Din, 16), (1, 16)     f32
        m1_ref, b1t_ref,            # (16, 64) bf16, (1, 64) f32
        s1_ref, g1_ref, be1_ref,    # (64, 16), (1, 16), (1, 16) f32
        m2_ref, b2t_ref,            # (64, 256) bf16, (1, 256) f32
        s2_ref, g2_ref, be2_ref,    # (256, 4), (1, 4), (1, 4) f32
        m3_ref, b3_ref,             # (256, 1024) bf16, (1, 1) f32
        out_ref,                    # (Bp, 1024)             f32
    ):
        x = x_ref[...]

        def bn_relu(a, sel, gamma, beta, count, reps):
            # Batch statistics over the REAL rows only (padding-safe).
            # Fuse (sum, sum-of-squares) pooling into a single matmul.
            ar = a[:nb_real]
            stats = jnp.concatenate(
                [jnp.sum(ar, axis=0, keepdims=True),
                 jnp.sum(ar * ar, axis=0, keepdims=True)],
                axis=0)                                                   # (2, ncols)
            pooled = jnp.dot(stats, sel, preferred_element_type=f32) / count  # (2, C)
            mean = pooled[0:1, :]
            var = jnp.maximum(pooled[1:2, :] - mean * mean, 0.0)          # clamp >= 0
            scale = gamma * jax.lax.rsqrt(var + BN_EPS)                   # (1, C)
            shift = beta - mean * scale                                   # (1, C)
            # Columns are channel-fastest: per-channel -> per-column is a
            # simple lane tile (no broadcast matmul needed).
            a = a * jnp.tile(scale, (1, reps)) + jnp.tile(shift, (1, reps))
            return jnp.maximum(a, 0.0)

        # Bayesian linear (sampled weights) + ReLU
        y = jnp.dot(x, w1t_ref[...], preferred_element_type=f32) + b1_ref[...]
        y = jnp.maximum(y, 0.0)                                           # (Bp, 16)

        # ConvTranspose2d(16->16, k=2, s=2) as one matmul, BN1 (batch stats), ReLU
        a1 = jnp.dot(y.astype(bf16), m1_ref[...],
                     preferred_element_type=f32) + b1t_ref[...]           # (Bp, 64)
        a1 = bn_relu(a1, s1_ref[...], g1_ref[...], be1_ref[...],
                     float(nb_real * 2 * 2), 4)

        # ConvTranspose2d(16->4, k=4, s=4), BN2, ReLU
        a2 = jnp.dot(a1.astype(bf16), m2_ref[...],
                     preferred_element_type=f32) + b2t_ref[...]           # (Bp, 256)
        a2 = bn_relu(a2, s2_ref[...], g2_ref[...], be2_ref[...],
                     float(nb_real * 8 * 8), 64)

        # ConvTranspose2d(4->1, k=4, s=4) + sigmoid (divide on EUP via approx recip)
        a3 = jnp.dot(a2.astype(bf16), m3_ref[...],
                     preferred_element_type=f32) + b3_ref[...]            # (Bp, 1024)
        out_ref[...] = pl.reciprocal(1.0 + jnp.exp(-a3), approx=True)

    return kernel


# ----------------------------------------------------------------------------
# One-time weight re-layout (amortizable across forward calls).
# ----------------------------------------------------------------------------
def prepare_operands(weights, params):
    f32 = jnp.float32
    bf16 = jnp.bfloat16

    # Linear layer operands
    w1t = weights["lin_w"].T.astype(f32)                        # (Din, 16)
    b1 = weights["lin_b"][None, :].astype(f32)                  # (1, 16)

    # conv1: (16,16,2,2) -> (Cin, (p,q,cout)) = (16, 64); bf16 for MXU
    m1 = jnp.transpose(weights["c1_w"], (0, 2, 3, 1)).reshape(16, 64).astype(bf16)
    b1t = jnp.tile(weights["c1_b"], 4)[None, :].astype(f32)     # (1, 64)
    s1 = jnp.tile(jnp.eye(16, dtype=f32), (4, 1))               # (64, 16) channel pool

    # conv2: block-diagonal over the 2x2 input positions -> (64, 256)
    w2r = jnp.transpose(weights["c2_w"], (0, 2, 3, 1)).reshape(16, 64)
    m2 = jnp.kron(jnp.eye(4, dtype=f32), w2r).astype(bf16)      # (64, 256)
    b2t = jnp.tile(weights["c2_b"], 64)[None, :].astype(f32)    # (1, 256)
    s2 = jnp.tile(jnp.eye(4, dtype=f32), (64, 1))               # (256, 4) channel pool

    # conv3: block-diagonal over the 8x8 input positions -> (256, 1024)
    # (dense kron is fine at small batch; compact (B*64,4)@(4,16) form only
    #  pays off at batch scale.)
    w3r = jnp.transpose(weights["c3_w"], (0, 2, 3, 1)).reshape(4, 16)
    m3 = jnp.kron(jnp.eye(64, dtype=f32), w3r).astype(bf16)     # (256, 1024)
    b3 = weights["c3_b"].reshape(1, 1).astype(f32)

    g1 = params["bn1_gamma"][None, :].astype(f32)
    be1 = params["bn1_beta"][None, :].astype(f32)
    g2 = params["bn2_gamma"][None, :].astype(f32)
    be2 = params["bn2_beta"][None, :].astype(f32)

    return (w1t, b1, m1, b1t, s1, g1, be1, m2, b2t, s2, g2, be2, m3, b3)


# ----------------------------------------------------------------------------
# KL(q || N(0,1)) over all Bayesian parameters -- x-independent, so it lives
# in plain JAX (hoisted out of the kernel).
# ----------------------------------------------------------------------------
def kl_divergence(params):
    kl = jnp.float32(0.0)
    for n in BAYES_NAMES:
        mu = params[n + "_mu"]
        sigma = jnp.log1p(jnp.exp(params[n + "_rho"]))
        kl = kl + jnp.sum(-jnp.log(sigma) + 0.5 * (sigma * sigma + mu * mu) - 0.5)
    return kl


# ----------------------------------------------------------------------------
# Forward wrapper: batch padding, pallas_call, output unscrambling.
# ----------------------------------------------------------------------------
def mini_dgbanr_forward(x, operands, params):
    f32 = jnp.float32
    B, din = x.shape
    bp = ((B + 7) // 8) * 8                                     # pad to f32 sublane
    x_p = jnp.zeros((bp, din), f32).at[:B, :].set(x.astype(f32))

    vmem = pl.BlockSpec(memory_space=pltpu.MemorySpace.VMEM)
    out_flat = pl.pallas_call(
        _make_kernel(B),
        out_shape=jax.ShapeDtypeStruct((bp, 1024), f32),
        in_specs=[vmem] * (1 + len(operands)),
        out_specs=vmem,
    )(x_p, *operands)

    # Unscramble kernel column order (p, q, p2, q2, p3, q3) into a 32x32 image.
    img = out_flat[:B].reshape(B, 2, 2, 4, 4, 4, 4)             # (b, p, q, p2, q2, p3, q3)
    img = jnp.transpose(img, (0, 1, 3, 5, 2, 4, 6))             # (b, p, p2, p3, q, q2, q3)
    img = img.reshape(B, 32, 32)
    return img, kl_divergence(params)


# ----------------------------------------------------------------------------
# Deterministic synthetic parameters (bayesian-torch style init).
# ----------------------------------------------------------------------------
def _init_bayes(key, shape):
    k_mu, k_rho = jax.random.split(key)
    mu = 0.1 * jax.random.normal(k_mu, shape, dtype=jnp.float32)
    rho = -3.0 + 0.1 * jax.random.normal(k_rho, shape, dtype=jnp.float32)
    return mu, rho


def init_params(key, input_size):
    ks = jax.random.split(key, 8)
    shapes = {
        "lin_w": (16, input_size), "lin_b": (16,),
        "c1_w": (16, 16, 2, 2), "c1_b": (16,),
        "c2_w": (16, 4, 4, 4), "c2_b": (4,),
        "c3_w": (4, 1, 4, 4), "c3_b": (1,),
    }
    p = {}
    for k, name in zip(ks, BAYES_NAMES):
        p[name + "_mu"], p[name + "_rho"] = _init_bayes(k, shapes[name])
    p["bn1_gamma"] = jnp.ones((16,), jnp.float32)
    p["bn1_beta"] = jnp.zeros((16,), jnp.float32)
    p["bn2_gamma"] = jnp.ones((4,), jnp.float32)
    p["bn2_beta"] = jnp.zeros((4,), jnp.float32)
    return p


def sample_weights(key, params):
    # Reparameterization trick: w = mu + softplus(rho) * eps, eps ~ N(0,1).
    ks = jax.random.split(key, len(BAYES_NAMES))
    w = {}
    for k, name in zip(ks, BAYES_NAMES):
        mu, rho = params[name + "_mu"], params[name + "_rho"]
        sigma = jnp.log1p(jnp.exp(rho))
        eps = jax.random.normal(k, mu.shape, dtype=jnp.float32)
        w[name] = mu + sigma * eps
    return w


# ----------------------------------------------------------------------------
# Plain-JAX reference (mirrors the PyTorch forward) for a sanity check.
# ----------------------------------------------------------------------------
def reference_forward(x, weights, params):
    def convT(a, w, b, k):
        Bb, Cin, H, W = a.shape
        Cout = w.shape[1]
        o = jnp.einsum("bihw,iopq->bohpwq", a, w).reshape(Bb, Cout, H * k, W * k)
        return o + b.reshape(1, Cout, 1, 1)

    def bn(a, g, be):
        m = jnp.mean(a, axis=(0, 2, 3), keepdims=True)
        v = jnp.var(a, axis=(0, 2, 3), keepdims=True)
        return (a - m) * jax.lax.rsqrt(v + BN_EPS) * g.reshape(1, -1, 1, 1) \
            + be.reshape(1, -1, 1, 1)

    y = jnp.maximum(x @ weights["lin_w"].T + weights["lin_b"], 0.0)
    a = y.reshape(-1, 16, 1, 1)
    a = jnp.maximum(bn(convT(a, weights["c1_w"], weights["c1_b"], 2),
                       params["bn1_gamma"], params["bn1_beta"]), 0.0)
    a = jnp.maximum(bn(convT(a, weights["c2_w"], weights["c2_b"], 4),
                       params["bn2_gamma"], params["bn2_beta"]), 0.0)
    a = convT(a, weights["c3_w"], weights["c3_b"], 4)
    img = jax.nn.sigmoid(a)[:, 0]

    def kl_term(mu, rho):
        s = jnp.log1p(jnp.exp(rho))
        return jnp.sum(-jnp.log(s) + 0.5 * (s * s + mu * mu) - 0.5)

    kl = sum(kl_term(params[n + "_mu"], params[n + "_rho"]) for n in BAYES_NAMES)
    return img, kl


if __name__ == "__main__":
    INPUT_SIZE, BATCH = 8, 2          # x: (2, 8); img_size = 32

    key = jax.random.PRNGKey(0)
    k_param, k_sample, k_x = jax.random.split(key, 3)
    params = init_params(k_param, INPUT_SIZE)
    weights = sample_weights(k_sample, params)
    x = jax.random.normal(k_x, (BATCH, INPUT_SIZE), dtype=jnp.float32)

    # One-time weight re-layout outside the jitted forward (amortized).
    operands = jax.block_until_ready(prepare_operands(weights, params))

    fwd = jax.jit(mini_dgbanr_forward)
    img, kl = fwd(x, operands, params)
    jax.block_until_ready((img, kl))

    img_ref, kl_ref = reference_forward(x, weights, params)
    assert img.shape == (BATCH, 32, 32)
    np.testing.assert_allclose(np.asarray(img), np.asarray(img_ref),
                               rtol=3e-2, atol=3e-2)
    np.testing.assert_allclose(float(kl), float(kl_ref), rtol=5e-3)

    print("KERNEL_OK")
</pallas_src>

<mosaic_0001>
module attributes {stable_mosaic.version = 11 : i64} {
  func.func @kernel(%arg0: memref<8x8xf32, #tpu.memory_space<vmem>>, %arg1: memref<8x16xf32, #tpu.memory_space<vmem>>, %arg2: memref<1x16xf32, #tpu.memory_space<vmem>>, %arg3: memref<16x64xbf16, #tpu.memory_space<vmem>>, %arg4: memref<1x64xf32, #tpu.memory_space<vmem>>, %arg5: memref<64x16xf32, #tpu.memory_space<vmem>>, %arg6: memref<1x16xf32, #tpu.memory_space<vmem>>, %arg7: memref<1x16xf32, #tpu.memory_space<vmem>>, %arg8: memref<64x256xbf16, #tpu.memory_space<vmem>>, %arg9: memref<1x256xf32, #tpu.memory_space<vmem>>, %arg10: memref<256x4xf32, #tpu.memory_space<vmem>>, %arg11: memref<1x4xf32, #tpu.memory_space<vmem>>, %arg12: memref<1x4xf32, #tpu.memory_space<vmem>>, %arg13: memref<256x1024xbf16, #tpu.memory_space<vmem>>, %arg14: memref<1x1xf32, #tpu.memory_space<vmem>>, %arg15: memref<8x1024xf32, #tpu.memory_space<vmem>>) attributes {dimension_semantics = [], scalar_prefetch = 0 : i64, scratch_operands = 0 : i64, tpu.core_type = #tpu.core_type<tc>} {
    %c0 = arith.constant 0 : index
    %c0_0 = arith.constant 0 : index
    %0 = vector.load %arg0[%c0, %c0_0] : memref<8x8xf32, #tpu.memory_space<vmem>>, vector<8x8xf32>
    %c0_1 = arith.constant 0 : index
    %c0_2 = arith.constant 0 : index
    %1 = vector.load %arg1[%c0_1, %c0_2] : memref<8x16xf32, #tpu.memory_space<vmem>>, vector<8x16xf32>
    %cst = arith.constant dense<0.000000e+00> : vector<8x16xf32>
    %2 = tpu.matmul %0, %1, %cst {dimension_numbers = #tpu.dot_dimension_numbers<[1], [0], [0], [1], [0, 0, 1, 1], [], []>} : vector<8x8xf32>, vector<8x16xf32>, vector<8x16xf32> -> vector<8x16xf32>
    %c0_3 = arith.constant 0 : index
    %c0_4 = arith.constant 0 : index
    %3 = vector.load %arg2[%c0_3, %c0_4] : memref<1x16xf32, #tpu.memory_space<vmem>>, vector<1x16xf32>
    %4 = vector.broadcast %3 : vector<1x16xf32> to vector<8x16xf32>
    %5 = arith.addf %2, %4 : vector<8x16xf32>
    %cst_5 = arith.constant 0.000000e+00 : f32
    %6 = vector.broadcast %cst_5 : f32 to vector<8x16xf32>
    %7 = arith.maximumf %5, %6 : vector<8x16xf32>
    %8 = arith.truncf %7 : vector<8x16xf32> to vector<8x16xbf16>
    %c0_6 = arith.constant 0 : index
    %c0_7 = arith.constant 0 : index
    %9 = vector.load %arg3[%c0_6, %c0_7] : memref<16x64xbf16, #tpu.memory_space<vmem>>, vector<16x64xbf16>
    %cst_8 = arith.constant dense<0.000000e+00> : vector<8x64xf32>
    %10 = tpu.matmul %8, %9, %cst_8 {dimension_numbers = #tpu.dot_dimension_numbers<[1], [0], [0], [1], [0, 0, 1, 1], [], []>} : vector<8x16xbf16>, vector<16x64xbf16>, vector<8x64xf32> -> vector<8x64xf32>
    %c0_9 = arith.constant 0 : index
    %c0_10 = arith.constant 0 : index
    %11 = vector.load %arg4[%c0_9, %c0_10] : memref<1x64xf32, #tpu.memory_space<vmem>>, vector<1x64xf32>
    %12 = vector.broadcast %11 : vector<1x64xf32> to vector<8x64xf32>
    %13 = arith.addf %10, %12 : vector<8x64xf32>
    %c0_11 = arith.constant 0 : index
    %c0_12 = arith.constant 0 : index
    %14 = vector.load %arg5[%c0_11, %c0_12] : memref<64x16xf32, #tpu.memory_space<vmem>>, vector<64x16xf32>
    %c0_13 = arith.constant 0 : index
    %c0_14 = arith.constant 0 : index
    %15 = vector.load %arg6[%c0_13, %c0_14] : memref<1x16xf32, #tpu.memory_space<vmem>>, vector<1x16xf32>
    %c0_15 = arith.constant 0 : index
    %c0_16 = arith.constant 0 : index
    %16 = vector.load %arg7[%c0_15, %c0_16] : memref<1x16xf32, #tpu.memory_space<vmem>>, vector<1x16xf32>
    %17 = vector.extract_strided_slice %13 {offsets = [0, 0], sizes = [2, 64], strides = [1, 1]} : vector<8x64xf32> to vector<2x64xf32>
    %cst_17 = arith.constant dense<0.000000e+00> : vector<64xf32>
    %18 = vector.multi_reduction <add>, %17, %cst_17 [0] : vector<2x64xf32> to vector<64xf32>
    %19 = vector.shape_cast %18 : vector<64xf32> to vector<1x64xf32>
    %20 = arith.mulf %17, %17 : vector<2x64xf32>
    %cst_18 = arith.constant dense<0.000000e+00> : vector<64xf32>
    %21 = vector.multi_reduction <add>, %20, %cst_18 [0] : vector<2x64xf32> to vector<64xf32>
    %22 = vector.shape_cast %21 : vector<64xf32> to vector<1x64xf32>
    %23 = tpu.concatenate %19, %22 in 0 : vector<1x64xf32>, vector<1x64xf32> -> vector<2x64xf32>
    %cst_19 = arith.constant dense<0.000000e+00> : vector<2x16xf32>
    %24 = tpu.matmul %23, %14, %cst_19 {dimension_numbers = #tpu.dot_dimension_numbers<[1], [0], [0], [1], [0, 0, 1, 1], [], []>} : vector<2x64xf32>, vector<64x16xf32>, vector<2x16xf32> -> vector<2x16xf32>
    %cst_20 = arith.constant 8.000000e+00 : f32
    %25 = vector.broadcast %cst_20 : f32 to vector<2x16xf32>
    %26 = arith.divf %24, %25 : vector<2x16xf32>
    %27 = vector.extract_strided_slice %26 {offsets = [0, 0], sizes = [1, 16], strides = [1, 1]} : vector<2x16xf32> to vector<1x16xf32>
    %28 = vector.extract_strided_slice %26 {offsets = [1, 0], sizes = [1, 16], strides = [1, 1]} : vector<2x16xf32> to vector<1x16xf32>
    %29 = arith.mulf %27, %27 : vector<1x16xf32>
    %30 = arith.subf %28, %29 : vector<1x16xf32>
    %cst_21 = arith.constant 0.000000e+00 : f32
    %31 = vector.broadcast %cst_21 : f32 to vector<1x16xf32>
    %32 = arith.maximumf %30, %31 : vector<1x16xf32>
    %cst_22 = arith.constant 9.99999974E-6 : f32
    %33 = vector.broadcast %cst_22 : f32 to vector<1x16xf32>
    %34 = arith.addf %32, %33 : vector<1x16xf32>
    %35 = math.rsqrt %34 : vector<1x16xf32>
    %36 = arith.mulf %15, %35 : vector<1x16xf32>
    %37 = arith.mulf %27, %36 : vector<1x16xf32>
    %38 = arith.subf %16, %37 : vector<1x16xf32>
    %39 = tpu.concatenate %36, %36, %36, %36 in 1 : vector<1x16xf32>, vector<1x16xf32>, vector<1x16xf32>, vector<1x16xf32> -> vector<1x64xf32>
    %40 = vector.broadcast %39 : vector<1x64xf32> to vector<8x64xf32>
    %41 = arith.mulf %13, %40 : vector<8x64xf32>
    %42 = tpu.concatenate %38, %38, %38, %38 in 1 : vector<1x16xf32>, vector<1x16xf32>, vector<1x16xf32>, vector<1x16xf32> -> vector<1x64xf32>
    %43 = vector.broadcast %42 : vector<1x64xf32> to vector<8x64xf32>
    %44 = arith.addf %41, %43 : vector<8x64xf32>
    %cst_23 = arith.constant 0.000000e+00 : f32
    %45 = vector.broadcast %cst_23 : f32 to vector<8x64xf32>
    %46 = arith.maximumf %44, %45 : vector<8x64xf32>
    %47 = arith.truncf %46 : vector<8x64xf32> to vector<8x64xbf16>
    %c0_24 = arith.constant 0 : index
    %c0_25 = arith.constant 0 : index
    %48 = vector.load %arg8[%c0_24, %c0_25] : memref<64x256xbf16, #tpu.memory_space<vmem>>, vector<64x256xbf16>
    %cst_26 = arith.constant dense<0.000000e+00> : vector<8x256xf32>
    %49 = tpu.matmul %47, %48, %cst_26 {dimension_numbers = #tpu.dot_dimension_numbers<[1], [0], [0], [1], [0, 0, 1, 1], [], []>} : vector<8x64xbf16>, vector<64x256xbf16>, vector<8x256xf32> -> vector<8x256xf32>
    %c0_27 = arith.constant 0 : index
    %c0_28 = arith.constant 0 : index
    %50 = vector.load %arg9[%c0_27, %c0_28] : memref<1x256xf32, #tpu.memory_space<vmem>>, vector<1x256xf32>
    %51 = vector.broadcast %50 : vector<1x256xf32> to vector<8x256xf32>
    %52 = arith.addf %49, %51 : vector<8x256xf32>
    %c0_29 = arith.constant 0 : index
    %c0_30 = arith.constant 0 : index
    %53 = vector.load %arg10[%c0_29, %c0_30] : memref<256x4xf32, #tpu.memory_space<vmem>>, vector<256x4xf32>
    %c0_31 = arith.constant 0 : index
    %c0_32 = arith.constant 0 : index
    %54 = vector.load %arg11[%c0_31, %c0_32] : memref<1x4xf32, #tpu.memory_space<vmem>>, vector<1x4xf32>
    %c0_33 = arith.constant 0 : index
    %c0_34 = arith.constant 0 : index
    %55 = vector.load %arg12[%c0_33, %c0_34] : memref<1x4xf32, #tpu.memory_space<vmem>>, vector<1x4xf32>
    %56 = vector.extract_strided_slice %52 {offsets = [0, 0], sizes = [2, 256], strides = [1, 1]} : vector<8x256xf32> to vector<2x256xf32>
    %cst_35 = arith.constant dense<0.000000e+00> : vector<256xf32>
    %57 = vector.multi_reduction <add>, %56, %cst_35 [0] : vector<2x256xf32> to vector<256xf32>
    %58 = vector.shape_cast %57 : vector<256xf32> to vector<1x256xf32>
    %59 = arith.mulf %56, %56 : vector<2x256xf32>
    %cst_36 = arith.constant dense<0.000000e+00> : vector<256xf32>
    %60 = vector.multi_reduction <add>, %59, %cst_36 [0] : vector<2x256xf32> to vector<256xf32>
    %61 = vector.shape_cast %60 : vector<256xf32> to vector<1x256xf32>
    %62 = tpu.concatenate %58, %61 in 0 : vector<1x256xf32>, vector<1x256xf32> -> vector<2x256xf32>
    %cst_37 = arith.constant dense<0.000000e+00> : vector<2x4xf32>
    %63 = tpu.matmul %62, %53, %cst_37 {dimension_numbers = #tpu.dot_dimension_numbers<[1], [0], [0], [1], [0, 0, 1, 1], [], []>} : vector<2x256xf32>, vector<256x4xf32>, vector<2x4xf32> -> vector<2x4xf32>
    %cst_38 = arith.constant 1.280000e+02 : f32
    %64 = vector.broadcast %cst_38 : f32 to vector<2x4xf32>
    %65 = arith.divf %63, %64 : vector<2x4xf32>
    %66 = vector.extract_strided_slice %65 {offsets = [0, 0], sizes = [1, 4], strides = [1, 1]} : vector<2x4xf32> to vector<1x4xf32>
    %67 = vector.extract_strided_slice %65 {offsets = [1, 0], sizes = [1, 4], strides = [1, 1]} : vector<2x4xf32> to vector<1x4xf32>
    %68 = arith.mulf %66, %66 : vector<1x4xf32>
    %69 = arith.subf %67, %68 : vector<1x4xf32>
    %cst_39 = arith.constant 0.000000e+00 : f32
    %70 = vector.broadcast %cst_39 : f32 to vector<1x4xf32>
    %71 = arith.maximumf %69, %70 : vector<1x4xf32>
    %cst_40 = arith.constant 9.99999974E-6 : f32
    %72 = vector.broadcast %cst_40 : f32 to vector<1x4xf32>
    %73 = arith.addf %71, %72 : vector<1x4xf32>
    %74 = math.rsqrt %73 : vector<1x4xf32>
    %75 = arith.mulf %54, %74 : vector<1x4xf32>
    %76 = arith.mulf %66, %75 : vector<1x4xf32>
    %77 = arith.subf %55, %76 : vector<1x4xf32>
    %78 = tpu.concatenate %75, %75, %75, %75, %75, %75, %75, %75, %75, %75, %75, %75, %75, %75, %75, %75, %75, %75, %75, %75, %75, %75, %75, %75, %75, %75, %75, %75, %75, %75, %75, %75, %75, %75, %75, %75, %75, %75, %75, %75, %75, %75, %75, %75, %75, %75, %75, %75, %75, %75, %75, %75, %75, %75, %75, %75, %75, %75, %75, %75, %75, %75, %75, %75 in 1 : vector<1x4xf32>, vector<1x4xf32>, vector<1x4xf32>, vector<1x4xf32>, vector<1x4xf32>, vector<1x4xf32>, vector<1x4xf32>, vector<1x4xf32>, vector<1x4xf32>, vector<1x4xf32>, vector<1x4xf32>, vector<1x4xf32>, vector<1x4xf32>, vector<1x4xf32>, vector<1x4xf32>, vector<1x4xf32>, vector<1x4xf32>, vector<1x4xf32>, vector<1x4xf32>, vector<1x4xf32>, vector<1x4xf32>, vector<1x4xf32>, vector<1x4xf32>, vector<1x4xf32>, vector<1x4xf32>, vector<1x4xf32>, vector<1x4xf32>, vector<1x4xf32>, vector<1x4xf32>, vector<1x4xf32>, vector<1x4xf32>, vector<1x4xf32>, vector<1x4xf32>, vector<1x4xf32>, vector<1x4xf32>, vector<1x4xf32>, vector<1x4xf32>, vector<1x4xf32>, vector<1x4xf32>, vector<1x4xf32>, vector<1x4xf32>, vector<1x4xf32>, vector<1x4xf32>, vector<1x4xf32>, vector<1x4xf32>, vector<1x4xf32>, vector<1x4xf32>, vector<1x4xf32>, vector<1x4xf32>, vector<1x4xf32>, vector<1x4xf32>, vector<1x4xf32>, vector<1x4xf32>, vector<1x4xf32>, vector<1x4xf32>, vector<1x4xf32>, vector<1x4xf32>, vector<1x4xf32>, vector<1x4xf32>, vector<1x4xf32>, vector<1x4xf32>, vector<1x4xf32>, vector<1x4xf32>, vector<1x4xf32> -> vector<1x256xf32>
    %79 = vector.broadcast %78 : vector<1x256xf32> to vector<8x256xf32>
    %80 = arith.mulf %52, %79 : vector<8x256xf32>
    %81 = tpu.concatenate %77, %77, %77, %77, %77, %77, %77, %77, %77, %77, %77, %77, %77, %77, %77, %77, %77, %77, %77, %77, %77, %77, %77, %77, %77, %77, %77, %77, %77, %77, %77, %77, %77, %77, %77, %77, %77, %77, %77, %77, %77, %77, %77, %77, %77, %77, %77, %77, %77, %77, %77, %77, %77, %77, %77, %77, %77, %77, %77, %77, %77, %77, %77, %77 in 1 : vector<1x4xf32>, vector<1x4xf32>, vector<1x4xf32>, vector<1x4xf32>, vector<1x4xf32>, vector<1x4xf32>, vector<1x4xf32>, vector<1x4xf32>, vector<1x4xf32>, vector<1x4xf32>, vector<1x4xf32>, vector<1x4xf32>, vector<1x4xf32>, vector<1x4xf32>, vector<1x4xf32>, vector<1x4xf32>, vector<1x4xf32>, vector<1x4xf32>, vector<1x4xf32>, vector<1x4xf32>, vector<1x4xf32>, vector<1x4xf32>, vector<1x4xf32>, vector<1x4xf32>, vector<1x4xf32>, vector<1x4xf32>, vector<1x4xf32>, vector<1x4xf32>, vector<1x4xf32>, vector<1x4xf32>, vector<1x4xf32>, vector<1x4xf32>, vector<1x4xf32>, vector<1x4xf32>, vector<1x4xf32>, vector<1x4xf32>, vector<1x4xf32>, vector<1x4xf32>, vector<1x4xf32>, vector<1x4xf32>, vector<1x4xf32>, vector<1x4xf32>, vector<1x4xf32>, vector<1x4xf32>, vector<1x4xf32>, vector<1x4xf32>, vector<1x4xf32>, vector<1x4xf32>, vector<1x4xf32>, vector<1x4xf32>, vector<1x4xf32>, vector<1x4xf32>, vector<1x4xf32>, vector<1x4xf32>, vector<1x4xf32>, vector<1x4xf32>, vector<1x4xf32>, vector<1x4xf32>, vector<1x4xf32>, vector<1x4xf32>, vector<1x4xf32>, vector<1x4xf32>, vector<1x4xf32>, vector<1x4xf32> -> vector<1x256xf32>
    %82 = vector.broadcast %81 : vector<1x256xf32> to vector<8x256xf32>
    %83 = arith.addf %80, %82 : vector<8x256xf32>
    %cst_41 = arith.constant 0.000000e+00 : f32
    %84 = vector.broadcast %cst_41 : f32 to vector<8x256xf32>
    %85 = arith.maximumf %83, %84 : vector<8x256xf32>
    %86 = arith.truncf %85 : vector<8x256xf32> to vector<8x256xbf16>
    %c0_42 = arith.constant 0 : index
    %c0_43 = arith.constant 0 : index
    %87 = vector.load %arg13[%c0_42, %c0_43] : memref<256x1024xbf16, #tpu.memory_space<vmem>>, vector<256x1024xbf16>
    %cst_44 = arith.constant dense<0.000000e+00> : vector<8x1024xf32>
    %88 = tpu.matmul %86, %87, %cst_44 {dimension_numbers = #tpu.dot_dimension_numbers<[1], [0], [0], [1], [0, 0, 1, 1], [], []>} : vector<8x256xbf16>, vector<256x1024xbf16>, vector<8x1024xf32> -> vector<8x1024xf32>
    %c0_45 = arith.constant 0 : index
    %c0_46 = arith.constant 0 : index
    %89 = vector.load %arg14[%c0_45, %c0_46] : memref<1x1xf32, #tpu.memory_space<vmem>>, vector<1x1xf32>
    %90 = vector.broadcast %89 : vector<1x1xf32> to vector<8x1024xf32>
    %91 = arith.addf %88, %90 : vector<8x1024xf32>
    %cst_47 = arith.constant 0.000000e+00 : f32
    %92 = vector.broadcast %cst_47 : f32 to vector<8x1024xf32>
    %93 = arith.subf %92, %91 : vector<8x1024xf32>
    %94 = math.exp %93 : vector<8x1024xf32>
    %cst_48 = arith.constant 1.000000e+00 : f32
    %95 = vector.broadcast %cst_48 : f32 to vector<8x1024xf32>
    %96 = arith.addf %95, %94 : vector<8x1024xf32>
    %97 = tpu.reciprocal %96 {approx = true} : vector<8x1024xf32> -> vector<8x1024xf32>
    %c0_49 = arith.constant 0 : index
    %c0_50 = arith.constant 0 : index
    %98 = vector.load %arg15[%c0_49, %c0_50] : memref<8x1024xf32, #tpu.memory_space<vmem>>, vector<8x1024xf32>
    tpu.vector_store %arg15[%c0_49, %c0_50], %97 {strides = array<i32>} : memref<8x1024xf32, #tpu.memory_space<vmem>>, vector<8x1024xf32>,
    return
  }
}

</mosaic_0001>

<bundles_post_ra>
// kernel: mini_dgbanr_forward.1
= control target key start
LH: loop header
LB: loop body
LE: loop exit
PB: predicated region body
PF: predicated region fallthrough
CT: control target
= control target key end

     0   :  { %s2869_s0 = inlined_call_operand.vmem [shape: f32[8,8], index: 0, kind: input, shape index: {}]   ;;  %s2870_s1 = inlined_call_operand.vmem [shape: f32[8,16], index: 1, kind: input, shape index: {}]   ;;  %s2871_s2 = inlined_call_operand.vmem [shape: f32[1,16], index: 2, kind: input, shape index: {}]   ;;  %s2872_s3 = inlined_call_operand.vmem [shape: bf16[16,64], index: 3, kind: input, shape index: {}]   ;;  %s2873_s4 = inlined_call_operand.vmem [shape: f32[1,64], index: 4, kind: input, shape index: {}]   ;;  %s2874_s5 = inlined_call_operand.vmem [shape: f32[64,16], index: 5, kind: input, shape index: {}]   ;;  %s2875_s6 = inlined_call_operand.vmem [shape: f32[1,16], index: 6, kind: input, shape index: {}]   ;;  %s2876_s7 = inlined_call_operand.vmem [shape: f32[1,16], index: 7, kind: input, shape index: {}]   ;;  %s2877_s8 = inlined_call_operand.vmem [shape: bf16[64,256], index: 8, kind: input, shape index: {}]   ;;  %s2878_s9 = inlined_call_operand.vmem [shape: f32[1,256], index: 9, kind: input, shape index: {}]   ;;  %s2879_s10 = inlined_call_operand.vmem [shape: f32[256,4], index: 10, kind: input, shape index: {}]   ;;  %s2880_s11 = inlined_call_operand.vmem [shape: f32[1,4], index: 11, kind: input, shape index: {}]   ;;  %s2881_s12 = inlined_call_operand.vmem [shape: f32[1,4], index: 12, kind: input, shape index: {}]   ;;  %s2882_s13 = inlined_call_operand.hbm [shape: bf16[256,1024], index: 13, kind: input, shape index: {}]   ;;  %s2883_s14 = inlined_call_operand.<no memory space> [shape: f32[1,1], index: 14, kind: input, shape index: {}]   ;;  %s2884_s15 = inlined_call_operand.vmem [shape: f32[8,1024], index: 15, kind: output, shape index: {}]  }
   0x1   :  { %v20_v0 = vstv %s2883_s14 }
   0x2   :  { %21 = vst [vmem:[#allocation2] sm:$0x1] %v20_v0 }
   0x3   :  { %22 = vsyncpa [#allocation4], 0  ;;  %s2288_s20 = smov [#allocation3]  }
   0x4   :  { %s54_s21 = sshll.u32 %s2288_s20, 4  ;;  %s55_s21 = int_to_ptr.vmem [resolvable:$true] %s54_s21 }
   0x5   :  { %s2274_s22 = scalar_lea.vmem %s55_s21, 16384  ;;  %p2279_p1 = scmp.lt.s32.totalorder %s55_s21, %s55_s21 }
   0x6   :  { %p2275_p0 = scmp.ne.s32.totalorder %s55_s21, %s2274_s22  ;;  %p2280_p2 = scmp.lt.s32.totalorder %s2274_s22, %s2274_s22 }
   0x8   :  { %p2281_p3 = por %p2280_p2, %p2279_p1 }
   0xa   :  { %p2282_p4 = pnand %p2281_p3, %p2275_p0 }
   0xc   :  { %2285 = shalt.err (!%p2282_p4)
}
   0xd   :  { %s2289_s23 = smov 512   ;;  %s2290_s24 = smov 32  }
   0xe   :  { %60 = dma.hbm_to_vmem [thread:$0]  %s2882_s13, 16384, %s55_s21, [#allocation4], %s2289_s23, %s2289_s23, %s2290_s24  }
   0xf   :  { %2286 = dma.done.wait [#allocation4], 16384  }
  0x10   :  { %2287 = vsyncadd [#allocation4], 4294950912  ;;  %v2291_v1 = vmov 0.0   ;;  %vm2292_vm0 = vmmov 0   ;;  %vm76_vm1 = vcmask 64512   ;;  %v68_v2 = vld [vmem:[%s2870_s1] sm:$0xff]  ;;  %v327_v51 = vlaneseq }
  0x11   :  { %2149 = vmatprep.subr.mxu0 %v2291_v1  ;;  %2151 = vmatprep.mubr.msk.f32.mxu0 %vm2292_vm0, %v2291_v1  ;;  %v67_v3 = vld [vmem:[%s2869_s0] sm:$0xff]  ;;  %vm167_vm2 = vcmask 130048   ;;  %v218_v11 = vld [vmem:[%s2874_s5 + $0x38] sm:$0xff]  ;;  %v217_v12 = vld [vmem:[%s2874_s5 + $0x30] sm:$0xff]  ;;  %vm221_vm3 = vcmask 517120   ;;  %vm237_vm4 = vcmask 1040384  }
  0x12   :  { %2154 = vmatprep.subr.bf16.mxu1 %v2291_v1  ;;  %2156 = vmatprep.mubr.msk.bf16.mxu1 %vm2292_vm0, %v2291_v1  ;;  %v2217_v4 = vld [vmem:[%s2872_s3] sm:$0xff]   ;;  %v216_v13 = vld [vmem:[%s2874_s5 + $0x28] sm:$0xff]  ;;  %v214_v15 = vld [vmem:[%s2874_s5 + $0x18] sm:$0xff]  ;;  %vm239_vm5 = vcmask 523264   ;;  %v2293_v49 = vmov 1966171168  }
  0x13   :  { %2150 = vmatpush3.msra.mxu0 %v68_v2  ;;  %2155 = vmatpush3.bf16.msra.mxu1 %v2217_v4  ;;  %v1957_v5 = vld [vmem:[%s2871_s2] ss:$0 sm:$0xff]  ;;  %v213_v16 = vld [vmem:[%s2874_s5 + $0x10] sm:$0xff]  ;;  %v212_v17 = vld [vmem:[%s2874_s5 + $0x8] sm:$0xff]  ;;  %v325_v50 = vunpack.c.l.s4 %v2293_v49  ;;  %v2463_v53 = vshrl.u32 %v327_v51, 7  ;;  %s2294_s27 = smov 48  }
  0x14   :  { %2152 = vmatmul.mubr.msk.f32.vlgmr.msra.gmra.mxu0 %vm76_vm1, %v67_v3  ;;  %2160 = vmatprep.subr.mxu1 %v2291_v1  ;;  %v215_v14 = vld [vmem:[%s2874_s5 + $0x20] sm:$0xff]  ;;  %v2218_v55 = vld [vmem:[%s2877_s8 + $0x30] ss:$8 sps:$4 sm:$0xff]   ;;  %v2220_v56 = vld [vmem:[%s2877_s8 + $0x34] ss:$8 sps:$4 sm:$0xff]   ;;  %s2295_s28 = smov 16  }
  0x15   :  { %v211_v18 = vld [vmem:[%s2874_s5] sm:$0xff]  ;;  %v326_v52 = vunpack.c.0.s8 %v325_v50  ;;  %v2486_v0 = vsub.s32 0, %v2463_v53  ;;  %v2224_v3 = vld [vmem:[%s2877_s8 + $0x10] ss:$8 sps:$4 sm:$0xff]   ;;  %vm358_vm6 = vcmask 261120   ;;  %vm360_vm7 = vcmask 392192  }
  0x16   :  { %v1959_v19 = vld [vmem:[%s2873_s4] ss:$0 sm:$0xff]  ;;  %v2223_v59 = vld [vmem:[%s2877_s8 + $0x24] ss:$8 sps:$4 sm:$0xff]   ;;  %v501_v49 = vld [vmem:[%s2879_s10 + $0x30] sm:$0xff]  ;;  %vm529_vm8 = vcmask 1041408  }
  0x17   :  { %v2466_v54 = vsub.s32 %v326_v52, %v2463_v53  ;;  %v2221_v61 = vld [vmem:[%s2877_s8 + $0x20] ss:$8 sps:$4 sm:$0xff]   ;;  %s2297_s13 = smov 8   ;;  %s2301_s30 = smov 24   ;;  %vm760_vm9 = vcmask 31744   ;;  %vm763_vm10 = vcmask 97280  }
  0x18   :  { %v219_v62 = vld [vmem:[%s2875_s6] sm:$0x1]  ;;  %v516_v50 = vld [vmem:[%s2879_s10 + $0xa8] sm:$0xff]  ;;  %s2302_s4 = smov 28   ;;  %s2303_s5 = smov 36   ;;  %vm766_vm11 = vcmask 162816  }
  0x19   :  { %v220_v4 = vld [vmem:[%s2876_s7] sm:$0x1]  ;;  %v500_v51 = vld [vmem:[%s2879_s10 + $0x28] sm:$0xff]  ;;  %s2299_s7 = smov 12   ;;  %s2306_s16 = smov 52   ;;  %vm768_vm12 = vcmask 195584  }
  0x1a   :  { %v515_v52 = vld [vmem:[%s2879_s10 + $0xa0] sm:$0xff]  ;;  %s2307_s17 = smov 56   ;;  %s2310_s0 = smov 68   ;;  %vm770_vm13 = vcmask 228352   ;;  %vm773_vm14 = vcmask 293888   ;;  %vm775_vm15 = vcmask 326656  }
  0x1b   :  { %s2311_s1 = smov 72   ;;  %s2312_s3 = smov 76  }
  0x1c   :  { %s2313_s18 = smov 80   ;;  %s2314_s2 = smov 84  }
  0x1d   :  { %s2315_s19 = smov 88   ;;  %s2316_s20 = smov 92  }
  0x1e   :  { %s2317_s21 = smov 96   ;;  %s2318_s22 = smov 100  }
  0x1f   :  { %s2319_s23 = smov 104   ;;  %s2320_s25 = smov 108  }
  0x20   :  { %s2321_s26 = smov 112   ;;  %s2322_s6 = smov 116  }
  0xd4   :  { %v146_v6 = vpop.f32.mrf.mxu0 }
  0xd5   :  { %v147_v7 = vadd.f32 %v1957_v5, %v146_v6 }
  0xd6   :  { %v2153_v8 = vpop.f32.mrf.mxu0 }
  0xd7   :  { %v150_v9 = vmax.f32 %v147_v7, 0.0  ;;  %v2229_v7 = vld [vmem:[%s2877_s8 + $0x4] ss:$8 sps:$4 sm:$0xff]  }
  0xd9   :  { %v151_v10 = vpack.c.bf16 %v150_v9, %v150_v9  ;;  %v2227_v9 = vld [vmem:[%s2877_s8] ss:$8 sps:$4 sm:$0xff]  }
  0xdb   :  { %2157 = vmatmul.mubr.msk.bf16.vlgmr.msra.gmra.mxu1 %vm167_vm2, %v151_v10 }
  0xdc   :  { %2176 = vmatprep.mubr.msk.f32.mxu1 %vm2292_vm0, %v2291_v1  ;;  %2161 = vmatpush3.msra.mxu1 %v218_v11  ;;  %v2296_v11 = vmov 0   ;;  %vm777_vm0 = vcmask 359424  }
  0xdd   :  { %2162 = vmatprep.subr.mxu1 %v2291_v1  ;;  %2216 = vset.pattern.permute.xlu0 %v2296_v11 }
  0xde   :  { %2163 = vmatpush3.msra.mxu1 %v217_v12  ;;  %v526_v12 = vld [vmem:[%s2879_s10 + $0xf8] sm:$0xff] }
  0xdf   :  { %2164 = vmatprep.subr.mxu1 %v2291_v1  ;;  %2114 = vmatprep.subr.mxu0 %v526_v12 }
  0xe0   :  { %2165 = vmatpush3.msra.mxu1 %v216_v13  ;;  %v510_v13 = vld [vmem:[%s2879_s10 + $0x78] sm:$0xff] }
  0xe1   :  { %2166 = vmatprep.subr.mxu1 %v2291_v1  ;;  %2115 = vmatpush3.msra.mxu0 %v510_v13 }
  0xe2   :  { %2167 = vmatpush3.msra.mxu1 %v215_v14  ;;  %v525_v14 = vld [vmem:[%s2879_s10 + $0xf0] sm:$0xff] }
  0xe3   :  { %2168 = vmatprep.subr.mxu1 %v2291_v1  ;;  %2116 = vmatprep.subr.mxu0 %v525_v14 }
  0xe4   :  { %2169 = vmatpush3.msra.mxu1 %v214_v15  ;;  %v509_v15 = vld [vmem:[%s2879_s10 + $0x70] sm:$0xff] }
  0xe5   :  { %2170 = vmatprep.subr.mxu1 %v2291_v1  ;;  %2117 = vmatpush3.msra.mxu0 %v509_v15 }
  0xe6   :  { %2171 = vmatpush3.msra.mxu1 %v213_v16  ;;  %v524_v16 = vld [vmem:[%s2879_s10 + $0xe8] sm:$0xff] }
  0xe7   :  { %2172 = vmatprep.subr.mxu1 %v2291_v1  ;;  %2118 = vmatprep.subr.mxu0 %v524_v16 }
  0xe8   :  { %2173 = vmatpush3.msra.mxu1 %v212_v17  ;;  %v508_v17 = vld [vmem:[%s2879_s10 + $0x68] sm:$0xff] }
  0xe9   :  { %2174 = vmatprep.subr.mxu1 %v2291_v1  ;;  %v2226_v1 = vld [vmem:[%s2877_s8 + $0x14] ss:$8 sps:$4 sm:$0xff]   ;;  %2119 = vmatpush3.msra.mxu0 %v508_v17  ;;  %s2304_s8 = smov 40  }
  0xea   :  { %2175 = vmatpush3.msra.mxu1 %v211_v18  ;;  %v523_v18 = vld [vmem:[%s2879_s10 + $0xe0] sm:$0xff] }
  0xeb   :  { %462 = vmatprep.subr.bf16.mxu1 %v2220_v56  ;;  %2120 = vmatprep.subr.mxu0 %v523_v18  ;;  %v514_v56 = vld [vmem:[%s2879_s10 + $0x98] sm:$0xff] }
 0x19b   :  { %v205_v20 = vpop.f32.mrf.mxu1 }
 0x19c   :  { %v2456_v21 = vadd.f32 %v1959_v19, %v205_v20  ;;  %v507_v19 = vld [vmem:[%s2879_s10 + $0x60] sm:$0xff]  ;;  %v522_v20 = vld [vmem:[%s2879_s10 + $0xd8] sm:$0xff] }
 0x19d   :  { %v2158_v22 = vpop.f32.mrf.mxu1  ;;  %2121 = vmatpush3.msra.mxu0 %v507_v19 }
 0x19e   :  { %v222_v23 = vsel %vm221_vm3, %v2456_v21, 0.0  ;;  %v229_v24 = vmul.f32 %v2456_v21, %v2456_v21  ;;  %v506_v22 = vld [vmem:[%s2879_s10 + $0x58] sm:$0xff]  ;;  %2122 = vmatprep.subr.mxu0 %v522_v20 }
 0x19f   :  { %v223_v25 = vrot.slane %v222_v23, 4  ;;  %v208_v26 = vpop.f32.mrf.mxu1  ;;  %2123 = vmatpush3.msra.mxu0 %v506_v22 }
 0x1a0   :  { %v230_v27 = vsel %vm221_vm3, %v229_v24, 0.0  ;;  %vm784_vm3 = vcmask 490496  }
 0x1a1   :  { %v224_v28 = vadd.f32 %v223_v25, %v222_v23  ;;  %v231_v29 = vrot.slane %v230_v27, 4  ;;  %v2159_v30 = vpop.f32.mrf.mxu1 }
 0x1a3   :  { %v225_v31 = vrot.slane %v224_v28, 2  ;;  %v232_v32 = vadd.f32 %v231_v29, %v230_v27 }
 0x1a5   :  { %v226_v33 = vadd.f32 %v225_v31, %v224_v28  ;;  %v233_v34 = vrot.slane %v232_v32, 2 }
 0x1a7   :  { %v227_v35 = vrot.slane %v226_v33, 1  ;;  %v234_v36 = vadd.f32 %v233_v34, %v232_v32 }
 0x1a9   :  { %v235_v37 = vrot.slane %v234_v36, 1  ;;  %v228_v38 = vadd.f32 %v227_v35, %v226_v33 }
 0x1ab   :  { %v236_v39 = vadd.f32 %v235_v37, %v234_v36 }
 0x1ad   :  { %v238_v40 = vsel %vm237_vm4, %v228_v38, %v236_v39 }
 0x1ae   :  { %2177 = vmatmul.mubr.msk.f32.vlgmr.msra.gmra.mxu1 %vm239_vm5, %v238_v40 }
 0x1af   :  { %463 = vmatpush1.bf16.msra.mxu1 %v2218_v55  ;;  %486 = vmatprep.mubr.bf16.mxu1 %v2296_v11  ;;  %v499_v55 = vld [vmem:[%s2879_s10 + $0x20] sm:$0xff] }
 0x1b0   :  { %464 = vmatprep.subr.bf16.mxu1 %v2223_v59  ;;  %v497_v59 = vld [vmem:[%s2879_s10 + $0x10] sm:$0xff] }
 0x1b3   :  { %465 = vmatpush1.bf16.msra.mxu1 %v2221_v61  ;;  %v496_v61 = vld [vmem:[%s2879_s10 + $0x8] sm:$0xff] }
 0x1b4   :  { %466 = vmatprep.subr.bf16.mxu1 %v2226_v1  ;;  %v399_v1 = vld [vmem:[%s2878_s9] sm:$0x3]  ;;  %s2323_s9 = smov 120  }
 0x1b7   :  { %467 = vmatpush1.bf16.msra.mxu1 %v2224_v3  ;;  %v404_v3 = vrot.slane %v399_v1, %v2486_v0 }
 0x1b8   :  { %468 = vmatprep.subr.bf16.mxu1 %v2229_v7 }
 0x1bb   :  { %469 = vmatpush1.bf16.msra.mxu1 %v2227_v9 }
 0x26e   :  { %v309_v41 = vpop.f32.mrf.mxu1 }
 0x26f   :  { %v314_v42 = vmul.f32 0.125, %v309_v41  ;;  %v521_v41 = vld [vmem:[%s2879_s10 + $0xd0] sm:$0xff] }
 0x270   :  { %v2178_v43 = vpop.f32.mrf.mxu1  ;;  %2124 = vmatprep.subr.mxu0 %v521_v41 }
 0x271   :  { %v315_v44 = vmul.f32 %v314_v42, %v314_v42  ;;  %v504_v43 = vld [vmem:[%s2879_s10 + $0x48] sm:$0xff] }
 0x273   :  { %v317_v45 = vrot.slane %v315_v44, 7  ;;  %v519_v44 = vld [vmem:[%s2879_s10 + $0xc0] sm:$0xff] }
 0x275   :  { %v319_v46 = vsub.f32 %v314_v42, %v317_v45  ;;  %v503_v45 = vld [vmem:[%s2879_s10 + $0x40] sm:$0xff] }
 0x277   :  { %v320_v47 = vmax.f32 %v319_v46, 0.0  ;;  %v518_v46 = vld [vmem:[%s2879_s10 + $0xb8] sm:$0xff] }
 0x279   :  { %v321_v48 = vadd.f32 1e-05, %v320_v47  ;;  %v502_v47 = vld [vmem:[%s2879_s10 + $0x38] sm:$0xff] }
 0x27b   :  { %2230 = vrsqrt.f32 %v321_v48  ;;  %v517_v48 = vld [vmem:[%s2879_s10 + $0xb0] sm:$0xff] }
 0x288   :  { %v2231_v57 = vpop.eup %2230 }
 0x289   :  { %v330_v58 = vrot.slane %v2231_v57, %v2466_v54  ;;  %v498_v57 = vld [vmem:[%s2879_s10 + $0x18] sm:$0xff] }
 0x28b   :  { %v331_v60 = vcombine.high %v330_v58, %v330_v58  ;;  %v513_v58 = vld [vmem:[%s2879_s10 + $0x90] sm:$0xff] }
 0x28d   :  { %v338_v63 = vrot.slane %v331_v60, %v2466_v54  ;;  %v512_v60 = vld [vmem:[%s2879_s10 + $0x88] sm:$0xff] }
 0x28f   :  { %v340_v2 = vmul.f32 %v338_v63, %v219_v62  ;;  %v511_v62 = vld [vmem:[%s2879_s10 + $0x80] sm:$0xff] }
 0x290   :  { %v495_v63 = vld [vmem:[%s2879_s10] sm:$0xff] }
 0x291   :  { %v341_v5 = vmul.f32 %v340_v2, %v314_v42  ;;  %v347_v6 = vrot.slane %v340_v2, %v2486_v0  ;;  %v505_v42 = vld [vmem:[%s2879_s10 + $0x50] sm:$0xff] }
 0x292   :  { %2125 = vmatpush3.msra.mxu0 %v505_v42 }
 0x293   :  { %354 = vrot.lane.b32.xlu1 %v347_v6, %s2294_s27  ;;  %348 = vrot.lane.b32.xlu0 %v347_v6, %s2295_s28  ;;  %v342_v8 = vsub.f32 %v220_v4, %v341_v5 }
 0x295   :  { %v371_v10 = vrot.slane %v342_v8, %v2486_v0 }
 0x297   :  { %351 = vrot.lane.b32.xlu0 %v347_v6, %s2290_s24  ;;  %372 = vrot.lane.b32.xlu1 %v371_v10, %s2295_s28 }
 0x29b   :  { %375 = vrot.lane.b32.xlu0 %v371_v10, %s2290_s24  ;;  %378 = vrot.lane.b32.xlu1 %v371_v10, %s2294_s27 }
 0x305   :  { %v355_v23 = vpop.permute.xlu1 %354  ;;  %v349_v24 = vpop.permute.xlu0 %348 }
 0x306   :  { %v357_v25 = vsel %vm167_vm2, %v340_v2, %v349_v24  ;;  %v407_v2 = vsub.s32 1, %v2463_v53 }
 0x308   :  { %v408_v4 = vrot.slane %v399_v1, %v407_v2  ;;  %v1022_v1 = vld [vmem:[#allocation3 + $0x1e0] sm:$0xff]  ;;  %v1019_v2 = vld [vmem:[#allocation3 + $0x1c8] sm:$0xff] }
 0x309   :  { %v352_v26 = vpop.permute.xlu0 %351  ;;  %v373_v27 = vpop.permute.xlu1 %372 }
 0x30a   :  { %v359_v28 = vsel %vm358_vm6, %v357_v25, %v352_v26  ;;  %v381_v31 = vsel %vm167_vm2, %v342_v8, %v373_v27 }
 0x30b   :  { %v361_v29 = vsel %vm360_vm7, %v359_v28, %v355_v23 }
 0x30c   :  { %v365_v30 = vrot.slane %v361_v29, %v2486_v0 }
 0x30d   :  { %v376_v32 = vpop.permute.xlu0 %375  ;;  %v379_v33 = vpop.permute.xlu1 %378 }
 0x30e   :  { %v382_v34 = vsel %vm358_vm6, %v381_v31, %v376_v32  ;;  %v366_v36 = vmul.f32 %v365_v30, %v2456_v21  ;;  %v520_v21 = vld [vmem:[%s2879_s10 + $0xc8] sm:$0xff]  ;;  %s2324_s10 = smov 124  }
 0x30f   :  { %v383_v35 = vsel %vm360_vm7, %v382_v34, %v379_v33  ;;  %2126 = vmatprep.subr.mxu0 %v520_v21 }
 0x310   :  { %v387_v37 = vrot.slane %v383_v35, %v2486_v0  ;;  %2127 = vmatpush3.msra.mxu0 %v504_v43 }
 0x311   :  { %2128 = vmatprep.subr.mxu0 %v519_v44 }
 0x312   :  { %v388_v38 = vadd.f32 %v387_v37, %v366_v36  ;;  %2129 = vmatpush3.msra.mxu0 %v503_v45 }
 0x313   :  { %2130 = vmatprep.subr.mxu0 %v518_v46 }
 0x314   :  { %v389_v39 = vmax.f32 %v388_v38, 0.0  ;;  %2131 = vmatpush3.msra.mxu0 %v502_v47 }
 0x315   :  { %2132 = vmatprep.subr.mxu0 %v517_v48 }
 0x316   :  { %v390_v40 = vpack.c.bf16 %v389_v39, %v389_v39  ;;  %2133 = vmatpush3.msra.mxu0 %v501_v49 }
 0x317   :  { %2134 = vmatprep.subr.mxu0 %v516_v50 }
 0x318   :  { %1971 = vmatmul.mubr.msk.bf16.vlgmr.msra.gmra.mxu1 %vm239_vm5, %v390_v40  ;;  %2135 = vmatpush3.msra.mxu0 %v500_v51 }
 0x319   :  { %2136 = vmatprep.subr.mxu0 %v515_v52 }
 0x31a   :  { %2137 = vmatpush3.msra.mxu0 %v499_v55 }
 0x31b   :  { %2138 = vmatprep.subr.mxu0 %v514_v56  ;;  %v527_v56 = vld [vmem:[%s2880_s11] sm:$0x1]  ;;  %s2298_s11 = smov 4  }
 0x31c   :  { %2139 = vmatpush3.msra.mxu0 %v498_v57 }
 0x31d   :  { %2140 = vmatprep.subr.mxu0 %v513_v58 }
 0x31e   :  { %2141 = vmatpush3.msra.mxu0 %v497_v59  ;;  %v528_v59 = vld [vmem:[%s2881_s12] sm:$0x1]  ;;  %s2300_s12 = smov 20  }
 0x31f   :  { %2142 = vmatprep.subr.mxu0 %v512_v60 }
 0x320   :  { %2143 = vmatpush3.msra.mxu0 %v496_v61 }
 0x321   :  { %2144 = vmatprep.subr.mxu0 %v511_v62 }
 0x322   :  { %2145 = vmatpush3.msra.mxu0 %v495_v63  ;;  %v1018_v63 = vld [vmem:[#allocation3 + $0x1c0] sm:$0xff] }
 0x3d8   :  { %v488_v5 = vpop.f32.mrf.mxu1 }
 0x3d9   :  { %v2622_v6 = vadd.f32 %v488_v5, %v404_v3  ;;  %v2029_v3 = vcombine.low %v1018_v63, %v1022_v1  ;;  %v1023_v5 = vld [vmem:[#allocation3 + $0x1e8] sm:$0xff] }
 0x3da   :  { %v490_v7 = vpop.f32.mrf.mxu1 }
 0x3db   :  { %v530_v8 = vsel %vm529_vm8, %v2622_v6, 0.0  ;;  %v544_v9 = vmul.f32 %v2622_v6, %v2622_v6  ;;  %v2627_v10 = vadd.f32 %v490_v7, %v408_v4  ;;  %v2030_v4 = vcombine.high %v1018_v63, %v1022_v1  ;;  %v966_v63 = vld [vmem:[#allocation3 + $0x20] sm:$0xff]  ;;  %v963_v1 = vld [vmem:[#allocation3 + $0x8] sm:$0xff] }
 0x3dc   :  { %v531_v11 = vrot.slane %v530_v8, 4  ;;  %v492_v12 = vpop.f32.mrf.mxu1  ;;  %v2031_v7 = vcombine.low %v1019_v2, %v1023_v5 }
 0x3dd   :  { %v546_v13 = vsel %vm529_vm8, %v544_v9, 0.0  ;;  %v537_v53 = vsel %vm529_vm8, %v2627_v10, 0.0  ;;  %v545_v14 = vmul.f32 %v2627_v10, %v2627_v10  ;;  %1740 = vmatprep.subr.bf16.mxu1 %v2030_v4  ;;  %v1010_v9 = vld [vmem:[#allocation3 + $0x180] sm:$0xff]  ;;  %v1011_v12 = vld [vmem:[#allocation3 + $0x188] sm:$0xff] }
 0x3de   :  { %v532_v15 = vadd.f32 %v531_v11, %v530_v8  ;;  %v547_v16 = vrot.slane %v546_v13, 4  ;;  %v538_v17 = vrot.slane %v537_v53, 4  ;;  %v493_v18 = vpop.f32.mrf.mxu1  ;;  %v2032_v8 = vcombine.high %v1019_v2, %v1023_v5  ;;  %1741 = vmatpush1.bf16.msra.mxu1 %v2029_v3  ;;  %v1014_v11 = vld [vmem:[#allocation3 + $0x1a0] sm:$0xff]  ;;  %v967_v4 = vld [vmem:[#allocation3 + $0x28] sm:$0xff] }
 0x3df   :  { %v553_v19 = vsel %vm529_vm8, %v545_v14, 0.0  ;;  %v1015_v14 = vld [vmem:[#allocation3 + $0x1a8] sm:$0xff]  ;;  %v1006_v18 = vld [vmem:[#allocation3 + $0x160] sm:$0xff]  ;;  %v1975_v5 = vcombine.low %v963_v1, %v967_v4  ;;  %vm791_vm8 = vcmask 621568  }
 0x3e0   :  { %v533_v20 = vrot.slane %v532_v15, 2  ;;  %v548_v22 = vadd.f32 %v547_v16, %v546_v13  ;;  %v539_v23 = vadd.f32 %v538_v17, %v537_v53  ;;  %v554_v24 = vrot.slane %v553_v19, 4  ;;  %1781 = vmatprep.subr.bf16.mxu0 %v2032_v8  ;;  %v1002_v17 = vld [vmem:[#allocation3 + $0x140] sm:$0xff] }
 0x3e1   :  { %v2021_v13 = vcombine.low %v1010_v9, %v1014_v11  ;;  %v2022_v53 = vcombine.high %v1010_v9, %v1014_v11  ;;  %v2024_v16 = vcombine.high %v1011_v12, %v1015_v14  ;;  %v1082_v8 = vld [vmem:[#allocation3 + $0x3c0] sm:$0xff]  ;;  %v1083_v11 = vld [vmem:[#allocation3 + $0x3c8] sm:$0xff] }
 0x3e2   :  { %v549_v25 = vrot.slane %v548_v22, 2  ;;  %v540_v26 = vrot.slane %v539_v23, 2  ;;  %v555_v27 = vadd.f32 %v554_v24, %v553_v19  ;;  %v534_v28 = vadd.f32 %v533_v20, %v532_v15  ;;  %v1003_v19 = vld [vmem:[#allocation3 + $0x148] sm:$0xff]  ;;  %v1086_v9 = vld [vmem:[#allocation3 + $0x3e0] sm:$0xff] }
 0x3e3   :  { %v2023_v15 = vcombine.low %v1011_v12, %v1015_v14  ;;  %1742 = vmatprep.subr.bf16.mxu1 %v2022_v53  ;;  %v2013_v20 = vcombine.low %v1002_v17, %v1006_v18  ;;  %v2093_v12 = vcombine.low %v1082_v8, %v1086_v9  ;;  %v1087_v53 = vld [vmem:[#allocation3 + $0x3e8] sm:$0xff] }
 0x3e4   :  { %v541_v29 = vadd.f32 %v540_v26, %v539_v23  ;;  %v556_v30 = vrot.slane %v555_v27, 2  ;;  %v550_v31 = vadd.f32 %v549_v25, %v548_v22  ;;  %v535_v35 = vrot.slane %v534_v28, 1  ;;  %1743 = vmatpush1.bf16.msra.mxu1 %v2021_v13  ;;  %v1007_v23 = vld [vmem:[#allocation3 + $0x168] sm:$0xff]  ;;  %v994_v26 = vld [vmem:[#allocation3 + $0x100] sm:$0xff] }
 0x3e5   :  { %v2014_v22 = vcombine.high %v1002_v17, %v1006_v18  ;;  %v2015_v24 = vcombine.low %v1003_v19, %v1007_v23  ;;  %v2016_v25 = vcombine.high %v1003_v19, %v1007_v23  ;;  %v2094_v13 = vcombine.high %v1082_v8, %v1086_v9  ;;  %v1078_v17 = vld [vmem:[#allocation3 + $0x3a0] sm:$0xff]  ;;  %v1075_v18 = vld [vmem:[#allocation3 + $0x388] sm:$0xff] }
 0x3e6   :  { %v542_v32 = vrot.slane %v541_v29, 1  ;;  %v557_v33 = vadd.f32 %v556_v30, %v555_v27  ;;  %v551_v34 = vrot.slane %v550_v31, 1  ;;  %v536_v40 = vadd.f32 %v535_v35, %v534_v28  ;;  %v998_v27 = vld [vmem:[#allocation3 + $0x120] sm:$0xff]  ;;  %v995_v28 = vld [vmem:[#allocation3 + $0x108] sm:$0xff] }
 0x3e7   :  { %1744 = vmatprep.subr.bf16.mxu1 %v2014_v22  ;;  %v2006_v30 = vcombine.high %v994_v26, %v998_v27  ;;  %v990_v35 = vld [vmem:[#allocation3 + $0xe0] sm:$0xff]  ;;  %v2095_v14 = vcombine.low %v1083_v11, %v1087_v53  ;;  %v1079_v22 = vld [vmem:[#allocation3 + $0x3a8] sm:$0xff] }
 0x3e8   :  { %v558_v36 = vrot.slane %v557_v33, 1  ;;  %v552_v37 = vadd.f32 %v551_v34, %v550_v31  ;;  %v543_v38 = vadd.f32 %v542_v32, %v541_v29  ;;  %1745 = vmatpush1.bf16.msra.mxu1 %v2013_v20  ;;  %v2005_v29 = vcombine.low %v994_v26, %v998_v27  ;;  %v999_v31 = vld [vmem:[#allocation3 + $0x128] sm:$0xff]  ;;  %v986_v34 = vld [vmem:[#allocation3 + $0xc0] sm:$0xff] }
 0x3e9   :  { %v2007_v32 = vcombine.low %v995_v28, %v999_v31  ;;  %1746 = vmatprep.subr.bf16.mxu1 %v2006_v30  ;;  %v2087_v23 = vcombine.low %v1075_v18, %v1079_v22  ;;  %v1070_v26 = vld [vmem:[#allocation3 + $0x360] sm:$0xff]  ;;  %v1067_v27 = vld [vmem:[#allocation3 + $0x348] sm:$0xff] }
 0x3ea   :  { %v559_v39 = vadd.f32 %v558_v36, %v557_v33  ;;  %v560_v42 = vsel %vm237_vm4, %v536_v40, %v552_v37  ;;  %v2008_v33 = vcombine.high %v995_v28, %v999_v31  ;;  %v987_v36 = vld [vmem:[#allocation3 + $0xc8] sm:$0xff]  ;;  %v1997_v37 = vcombine.low %v986_v34, %v990_v35  ;;  %v1030_v8 = vld [vmem:[#allocation3 + $0x220] sm:$0xff] }
 0x3eb   :  { %v1071_v30 = vld [vmem:[#allocation3 + $0x368] sm:$0xff] }
 0x3ec   :  { %v561_v41 = vsel %vm237_vm4, %v543_v38, %v559_v39  ;;  %1747 = vmatpush1.bf16.msra.mxu1 %v2005_v29  ;;  %v1998_v38 = vcombine.high %v986_v34, %v990_v35  ;;  %v991_v39 = vld [vmem:[#allocation3 + $0xe8] sm:$0xff]  ;;  %v2079_v31 = vcombine.low %v1067_v27, %v1071_v30  ;;  %v1062_v34 = vld [vmem:[#allocation3 + $0x320] sm:$0xff]  ;;  %vm787_vm4 = vcmask 556032  }
 0x3ed   :  { %626 = vmatprep.mubr.f32.mxu0 %v561_v41  ;;  %v1999_v40 = vcombine.low %v987_v36, %v991_v39  ;;  %v2000_v41 = vcombine.high %v987_v36, %v991_v39  ;;  %v1059_v35 = vld [vmem:[#allocation3 + $0x308] sm:$0xff] }
 0x3ee   :  { %627 = vmatmul.mubr.f32.vlgmr.msra.gmra.mxu0 %v560_v42  ;;  %1748 = vmatprep.subr.bf16.mxu1 %v1998_v38  ;;  %v978_v42 = vld [vmem:[#allocation3 + $0x80] sm:$0xff]  ;;  %v1063_v38 = vld [vmem:[#allocation3 + $0x328] sm:$0xff] }
 0x3ef   :  { %1782 = vmatpush1.bf16.msra.mxu0 %v2031_v7  ;;  %v1976_v7 = vcombine.high %v963_v1, %v967_v4  ;;  %v2071_v39 = vcombine.low %v1059_v35, %v1063_v38  ;;  %v1027_v9 = vld [vmem:[#allocation3 + $0x208] sm:$0xff] }
 0x3f0   :  { %1783 = vmatprep.subr.bf16.mxu0 %v2024_v16  ;;  %1749 = vmatpush1.bf16.msra.mxu1 %v1997_v37  ;;  %v1074_v16 = vld [vmem:[#allocation3 + $0x380] sm:$0xff] }
 0x3f1   :  { %v2085_v19 = vcombine.low %v1074_v16, %v1078_v17  ;;  %v2086_v20 = vcombine.high %v1074_v16, %v1078_v17  ;;  %v2749_v17 = vld [vmem:[#allocation3 + $0x1d0] sm:$0xff] }
 0x3f3   :  { %1784 = vmatpush1.bf16.msra.mxu0 %v2023_v15  ;;  %v2096_v15 = vcombine.high %v1083_v11, %v1087_v53 }
 0x3f4   :  { %1785 = vmatprep.subr.bf16.mxu0 %v2016_v25  ;;  %v1066_v25 = vld [vmem:[#allocation3 + $0x340] sm:$0xff] }
 0x3f5   :  { %v2077_v28 = vcombine.low %v1066_v25, %v1070_v26  ;;  %v2078_v29 = vcombine.high %v1066_v25, %v1070_v26 }
 0x3f7   :  { %1786 = vmatpush1.bf16.msra.mxu0 %v2015_v24  ;;  %v2088_v24 = vcombine.high %v1075_v18, %v1079_v22  ;;  %v2751_v18 = vld [vmem:[#allocation3 + $0x1f0] sm:$0xff] }
 0x3f8   :  { %1787 = vmatprep.subr.bf16.mxu0 %v2008_v33  ;;  %v1058_v33 = vld [vmem:[#allocation3 + $0x300] sm:$0xff]  ;;  %v2034_v22 = vcombine.high %v2749_v17, %v2751_v18  ;;  %v2033_v25 = vcombine.low %v2749_v17, %v2751_v18 }
 0x3f9   :  { %v2069_v36 = vcombine.low %v1058_v33, %v1062_v34  ;;  %v2070_v37 = vcombine.high %v1058_v33, %v1062_v34 }
 0x3fb   :  { %1788 = vmatpush1.bf16.msra.mxu0 %v2007_v32  ;;  %v2080_v32 = vcombine.high %v1067_v27, %v1071_v30 }
 0x3fc   :  { %1789 = vmatprep.subr.bf16.mxu0 %v2000_v41  ;;  %v1050_v41 = vld [vmem:[#allocation3 + $0x2c0] sm:$0xff] }
 0x3ff   :  { %1790 = vmatpush1.bf16.msra.mxu0 %v1999_v40  ;;  %v2072_v40 = vcombine.high %v1059_v35, %v1063_v38 }
 0x4ae   :  { %v2146_v21 = vpop.f32.mrf.mxu0 }
 0x4b0   :  { %v2147_v43 = vpop.f32.mrf.mxu0 }
 0x4b1   :  { %v2148_v44 = vadd.f32 %v2147_v43, %v2146_v21  ;;  %v982_v21 = vld [vmem:[#allocation3 + $0xa0] sm:$0xff]  ;;  %v979_v43 = vld [vmem:[#allocation3 + $0x88] sm:$0xff] }
 0x4b3   :  { %v633_v45 = vmul.f32 0.0078125, %v2148_v44  ;;  %v1989_v44 = vcombine.low %v978_v42, %v982_v21 }
 0x4b5   :  { %v634_v46 = vmul.f32 %v633_v45, %v633_v45 }
 0x4b7   :  { %v636_v47 = vrot.slane %v634_v46, 7  ;;  %v983_v46 = vld [vmem:[#allocation3 + $0xa8] sm:$0xff] }
 0x4b9   :  { %v638_v48 = vsub.f32 %v633_v45, %v636_v47  ;;  %v1991_v47 = vcombine.low %v979_v43, %v983_v46 }
 0x4bb   :  { %v639_v49 = vmax.f32 %v638_v48, 0.0  ;;  %v1992_v48 = vcombine.high %v979_v43, %v983_v46 }
 0x4bd   :  { %v640_v50 = vadd.f32 1e-05, %v639_v49  ;;  %1791 = vmatprep.subr.bf16.mxu0 %v1992_v48  ;;  %v970_v49 = vld [vmem:[#allocation3 + $0x40] sm:$0xff] }
 0x4be   :  { %1792 = vmatpush1.bf16.msra.mxu0 %v1991_v47  ;;  %v1042_v48 = vld [vmem:[#allocation3 + $0x280] sm:$0xff] }
 0x4bf   :  { %2232 = vrsqrt.f32 %v640_v50  ;;  %v974_v50 = vld [vmem:[#allocation3 + $0x60] sm:$0xff] }
 0x4cc   :  { %v2233_v51 = vpop.eup %2232 }
 0x4cd   :  { %v649_v52 = vrot.slane %v2233_v51, %v2466_v54  ;;  %v971_v51 = vld [vmem:[#allocation3 + $0x48] sm:$0xff] }
 0x4cf   :  { %v650_v55 = vcombine.high %v649_v52, %v649_v52  ;;  %v1981_v52 = vcombine.low %v970_v49, %v974_v50 }
 0x4d1   :  { %v657_v57 = vrot.slane %v650_v55, %v2466_v54  ;;  %v1982_v55 = vcombine.high %v970_v49, %v974_v50  ;;  %v1046_v49 = vld [vmem:[#allocation3 + $0x2a0] sm:$0xff]  ;;  %v1043_v50 = vld [vmem:[#allocation3 + $0x288] sm:$0xff] }
 0x4d3   :  { %v2639_v58 = vmul.f32 %v657_v57, %v527_v56  ;;  %v975_v56 = vld [vmem:[#allocation3 + $0x68] sm:$0xff] }
 0x4d4   :  { %v1983_v57 = vcombine.low %v971_v51, %v975_v56 }
 0x4d5   :  { %v660_v60 = vmul.f32 %v2639_v58, %v633_v45  ;;  %v2647_v61 = vrot.slane %v2639_v58, %v2486_v0  ;;  %v1990_v45 = vcombine.high %v978_v42, %v982_v21  ;;  %v1054_v42 = vld [vmem:[#allocation3 + $0x2e0] sm:$0xff]  ;;  %v1051_v21 = vld [vmem:[#allocation3 + $0x2c8] sm:$0xff] }
 0x4d6   :  { %v2061_v43 = vcombine.low %v1050_v41, %v1054_v42 }
 0x4d7   :  { %v2649_v62 = vsub.f32 %v528_v59, %v660_v60  ;;  %670 = vrot.lane.b32.xlu1 %v2647_v61, %s2297_s13  ;;  %667 = vrot.lane.b32.xlu0 %v2647_v61, %s2298_s11  ;;  %v1984_v59 = vcombine.high %v971_v51, %v975_v56  ;;  %v962_v60 = vld [vmem:[#allocation3] sm:$0xff]  ;;  %v2054_v51 = vcombine.high %v1042_v48, %v1046_v49 }
 0x4d8   :  { %1750 = vmatprep.subr.bf16.mxu1 %v1990_v45  ;;  %v1973_v2 = vcombine.low %v962_v60, %v966_v63  ;;  %v1974_v3 = vcombine.high %v962_v60, %v966_v63  ;;  %v1055_v45 = vld [vmem:[#allocation3 + $0x2e8] sm:$0xff]  ;;  %v1038_v60 = vld [vmem:[#allocation3 + $0x260] sm:$0xff] }
 0x4d9   :  { %v2655_v54 = vrot.slane %v2649_v62, %v2486_v0  ;;  %1751 = vmatpush1.bf16.msra.mxu1 %v1989_v44  ;;  %1793 = vmatprep.subr.bf16.mxu0 %v1984_v59  ;;  %v2062_v44 = vcombine.high %v1050_v41, %v1054_v42  ;;  %v2063_v46 = vcombine.low %v1051_v21, %v1055_v45  ;;  %v1034_v59 = vld [vmem:[#allocation3 + $0x240] sm:$0xff]  ;;  %v1035_v63 = vld [vmem:[#allocation3 + $0x248] sm:$0xff] }
 0x4da   :  { %1752 = vmatprep.subr.bf16.mxu1 %v1982_v55  ;;  %1794 = vmatpush1.bf16.msra.mxu0 %v1983_v57  ;;  %v2064_v47 = vcombine.high %v1051_v21, %v1055_v45  ;;  %v2053_v55 = vcombine.low %v1042_v48, %v1046_v49  ;;  %v2046_v1 = vcombine.high %v1034_v59, %v1038_v60 }
 0x4db   :  { %673 = vrot.lane.b32.xlu0 %v2647_v61, %s2299_s7  ;;  %828 = vrot.lane.b32.xlu1 %v2655_v54, %s2298_s11 }
 0x4dc   :  { %1795 = vmatprep.subr.bf16.mxu0 %v1976_v7  ;;  %v1026_v7 = vld [vmem:[#allocation3 + $0x200] sm:$0xff] }
 0x4dd   :  { %1753 = vmatpush1.bf16.msra.mxu1 %v1981_v52  ;;  %v1047_v52 = vld [vmem:[#allocation3 + $0x2a8] sm:$0xff]  ;;  %v2038_v11 = vcombine.high %v1026_v7, %v1030_v8 }
 0x4de   :  { %1754 = vmatprep.subr.bf16.mxu1 %v1974_v3  ;;  %1796 = vmatpush1.bf16.msra.mxu0 %v1975_v5  ;;  %v2055_v56 = vcombine.low %v1043_v50, %v1047_v52  ;;  %v2056_v57 = vcombine.high %v1043_v50, %v1047_v52  ;;  %v2045_v3 = vcombine.low %v1034_v59, %v1038_v60 }
 0x4df   :  { %676 = vrot.lane.b32.xlu0 %v2647_v61, %s2295_s28  ;;  %831 = vrot.lane.b32.xlu1 %v2655_v54, %s2297_s13 }
 0x4e0   :  { %1797 = vmatprep.subr.bf16.mxu0 %v2096_v15 }
 0x4e1   :  { %1755 = vmatpush1.bf16.msra.mxu1 %v1973_v2  ;;  %v1039_v2 = vld [vmem:[#allocation3 + $0x268] sm:$0xff] }
 0x4e2   :  { %1756 = vmatprep.subr.bf16.mxu1 %v2094_v13  ;;  %1798 = vmatpush2.bf16.msra.mxu0 %v2095_v14  ;;  %v2047_v4 = vcombine.low %v1035_v63, %v1039_v2  ;;  %v2048_v5 = vcombine.high %v1035_v63, %v1039_v2  ;;  %v2037_v13 = vcombine.low %v1026_v7, %v1030_v8 }
 0x4e3   :  { %679 = vrot.lane.b32.xlu0 %v2647_v61, %s2300_s12  ;;  %834 = vrot.lane.b32.xlu1 %v2655_v54, %s2299_s7 }
 0x4e4   :  { %1799 = vmatprep.subr.bf16.mxu0 %v2088_v24 }
 0x4e5   :  { %1757 = vmatpush2.bf16.msra.mxu1 %v2093_v12  ;;  %v1031_v12 = vld [vmem:[#allocation3 + $0x228] sm:$0xff] }
 0x4e6   :  { %1758 = vmatprep.subr.bf16.mxu1 %v2086_v20  ;;  %1800 = vmatpush2.bf16.msra.mxu0 %v2087_v23  ;;  %v2039_v53 = vcombine.low %v1027_v9, %v1031_v12  ;;  %v2040_v14 = vcombine.high %v1027_v9, %v1031_v12  ;;  %v2759_v23 = vld [vmem:[#allocation3 + $0x1f8] sm:$0xff] }
 0x4e7   :  { %682 = vrot.lane.b32.xlu0 %v2647_v61, %s2301_s30  ;;  %837 = vrot.lane.b32.xlu1 %v2655_v54, %s2295_s28  ;;  %s2305_s28 = smov 44  }
 0x4e8   :  { %1801 = vmatprep.subr.bf16.mxu0 %v2080_v32 }
 0x4e9   :  { %1759 = vmatpush2.bf16.msra.mxu1 %v2085_v19  ;;  %v2753_v19 = vld [vmem:[#allocation3 + $0x1d8] sm:$0xff] }
 0x4ea   :  { %1760 = vmatprep.subr.bf16.mxu1 %v2078_v29  ;;  %1802 = vmatpush2.bf16.msra.mxu0 %v2079_v31  ;;  %v2036_v26 = vcombine.high %v2753_v19, %v2759_v23 }
 0x4eb   :  { %685 = vrot.lane.b32.xlu0 %v2647_v61, %s2302_s4  ;;  %840 = vrot.lane.b32.xlu1 %v2655_v54, %s2300_s12 }
 0x4ec   :  { %1803 = vmatprep.subr.bf16.mxu0 %v2072_v40 }
 0x4ed   :  { %1761 = vmatpush2.bf16.msra.mxu1 %v2077_v28 }
 0x4ee   :  { %1762 = vmatprep.subr.bf16.mxu1 %v2070_v37  ;;  %1804 = vmatpush2.bf16.msra.mxu0 %v2071_v39 }
 0x4ef   :  { %688 = vrot.lane.b32.xlu0 %v2647_v61, %s2290_s24  ;;  %843 = vrot.lane.b32.xlu1 %v2655_v54, %s2301_s30 }
 0x4f0   :  { %1805 = vmatprep.subr.bf16.mxu0 %v2064_v47 }
 0x4f1   :  { %1763 = vmatpush2.bf16.msra.mxu1 %v2069_v36 }
 0x4f2   :  { %1764 = vmatprep.subr.bf16.mxu1 %v2062_v44  ;;  %1806 = vmatpush2.bf16.msra.mxu0 %v2063_v46 }
 0x4f3   :  { %691 = vrot.lane.b32.xlu0 %v2647_v61, %s2303_s5  ;;  %846 = vrot.lane.b32.xlu1 %v2655_v54, %s2302_s4 }
 0x4f4   :  { %1807 = vmatprep.subr.bf16.mxu0 %v2056_v57 }
 0x4f5   :  { %1765 = vmatpush2.bf16.msra.mxu1 %v2061_v43 }
 0x4f6   :  { %1766 = vmatprep.subr.bf16.mxu1 %v2054_v51  ;;  %1808 = vmatpush2.bf16.msra.mxu0 %v2055_v56 }
 0x4f7   :  { %694 = vrot.lane.b32.xlu0 %v2647_v61, %s2304_s8  ;;  %849 = vrot.lane.b32.xlu1 %v2655_v54, %s2290_s24  ;;  %s2308_s24 = smov 60  }
 0x4f8   :  { %1809 = vmatprep.subr.bf16.mxu0 %v2048_v5 }
 0x4f9   :  { %1767 = vmatpush2.bf16.msra.mxu1 %v2053_v55 }
 0x4fa   :  { %1768 = vmatprep.subr.bf16.mxu1 %v2046_v1  ;;  %1810 = vmatpush2.bf16.msra.mxu0 %v2047_v4 }
 0x4fb   :  { %697 = vrot.lane.b32.xlu0 %v2647_v61, %s2305_s28  ;;  %852 = vrot.lane.b32.xlu1 %v2655_v54, %s2303_s5 }
 0x4fc   :  { %1811 = vmatprep.subr.bf16.mxu0 %v2040_v14 }
 0x4fd   :  { %1769 = vmatpush2.bf16.msra.mxu1 %v2045_v3 }
 0x4fe   :  { %1770 = vmatprep.subr.bf16.mxu1 %v2038_v11  ;;  %1812 = vmatpush2.bf16.msra.mxu0 %v2039_v53 }
 0x4ff   :  { %700 = vrot.lane.b32.xlu0 %v2647_v61, %s2294_s27  ;;  %855 = vrot.lane.b32.xlu1 %v2655_v54, %s2304_s8 }
 0x500   :  { %1863 = vmatprep.subr.bf16.mxu0 %v2036_v26 }
 0x501   :  { %1771 = vmatpush2.bf16.msra.mxu1 %v2037_v13 }
 0x502   :  { %1822 = vmatprep.subr.bf16.mxu1 %v2034_v22 }
 0x503   :  { %703 = vrot.lane.b32.xlu0 %v2647_v61, %s2306_s16  ;;  %858 = vrot.lane.b32.xlu1 %v2655_v54, %s2305_s28 }
 0x507   :  { %706 = vrot.lane.b32.xlu0 %v2647_v61, %s2307_s17  ;;  %861 = vrot.lane.b32.xlu1 %v2655_v54, %s2294_s27  ;;  %s2309_s27 = smov 64  }
 0x50b   :  { %709 = vrot.lane.b32.xlu0 %v2647_v61, %s2308_s24  ;;  %864 = vrot.lane.b32.xlu1 %v2655_v54, %s2306_s16 }
 0x50f   :  { %712 = vrot.lane.b32.xlu0 %v2647_v61, %s2309_s27  ;;  %867 = vrot.lane.b32.xlu1 %v2655_v54, %s2307_s17 }
 0x513   :  { %715 = vrot.lane.b32.xlu0 %v2647_v61, %s2310_s0  ;;  %870 = vrot.lane.b32.xlu1 %v2655_v54, %s2308_s24 }
 0x517   :  { %718 = vrot.lane.b32.xlu0 %v2647_v61, %s2311_s1  ;;  %873 = vrot.lane.b32.xlu1 %v2655_v54, %s2309_s27 }
 0x51b   :  { %721 = vrot.lane.b32.xlu0 %v2647_v61, %s2312_s3  ;;  %876 = vrot.lane.b32.xlu1 %v2655_v54, %s2310_s0 }
 0x51f   :  { %724 = vrot.lane.b32.xlu0 %v2647_v61, %s2313_s18  ;;  %879 = vrot.lane.b32.xlu1 %v2655_v54, %s2311_s1 }
 0x523   :  { %727 = vrot.lane.b32.xlu0 %v2647_v61, %s2314_s2  ;;  %882 = vrot.lane.b32.xlu1 %v2655_v54, %s2312_s3 }
 0x527   :  { %730 = vrot.lane.b32.xlu0 %v2647_v61, %s2315_s19  ;;  %885 = vrot.lane.b32.xlu1 %v2655_v54, %s2313_s18 }
 0x52b   :  { %733 = vrot.lane.b32.xlu0 %v2647_v61, %s2316_s20  ;;  %888 = vrot.lane.b32.xlu1 %v2655_v54, %s2314_s2 }
 0x52f   :  { %736 = vrot.lane.b32.xlu0 %v2647_v61, %s2317_s21  ;;  %891 = vrot.lane.b32.xlu1 %v2655_v54, %s2315_s19 }
 0x533   :  { %739 = vrot.lane.b32.xlu0 %v2647_v61, %s2318_s22  ;;  %894 = vrot.lane.b32.xlu1 %v2655_v54, %s2316_s20 }
 0x537   :  { %742 = vrot.lane.b32.xlu0 %v2647_v61, %s2319_s23  ;;  %897 = vrot.lane.b32.xlu1 %v2655_v54, %s2317_s21 }
 0x53b   :  { %745 = vrot.lane.b32.xlu0 %v2647_v61, %s2320_s25  ;;  %900 = vrot.lane.b32.xlu1 %v2655_v54, %s2318_s22 }
 0x53f   :  { %748 = vrot.lane.b32.xlu0 %v2647_v61, %s2321_s26  ;;  %903 = vrot.lane.b32.xlu1 %v2655_v54, %s2319_s23 }
 0x543   :  { %751 = vrot.lane.b32.xlu0 %v2647_v61, %s2322_s6  ;;  %906 = vrot.lane.b32.xlu1 %v2655_v54, %s2320_s25 }
 0x547   :  { %754 = vrot.lane.b32.xlu0 %v2647_v61, %s2323_s9  ;;  %909 = vrot.lane.b32.xlu1 %v2655_v54, %s2321_s26 }
 0x549   :  { %v671_v15 = vpop.permute.xlu1 %670  ;;  %v668_v16 = vpop.permute.xlu0 %667 }
 0x54a   :  { %v761_v20 = vsel %vm760_vm9, %v2639_v58, %v668_v16  ;;  %v2035_v58 = vcombine.low %v2753_v19, %v2759_v23  ;;  %v1972_v16 = vld [vmem:[#allocation2] ss:$0 sm:$0xff] }
 0x54b   :  { %757 = vrot.lane.b32.xlu0 %v2647_v61, %s2324_s10  ;;  %912 = vrot.lane.b32.xlu1 %v2655_v54, %s2322_s6  ;;  %v762_v24 = vsel %vm76_vm1, %v761_v20, %v671_v15 }
 0x54d   :  { %v674_v27 = vpop.permute.xlu0 %673  ;;  %v829_v28 = vpop.permute.xlu1 %828 }
 0x54e   :  { %v764_v61 = vsel %vm763_vm10, %v762_v24, %v674_v27  ;;  %v921_v29 = vsel %vm760_vm9, %v2649_v62, %v829_v28  ;;  %vm793_vm9 = vcmask 654336  }
 0x54f   :  { %915 = vrot.lane.b32.xlu0 %v2655_v54, %s2323_s9  ;;  %918 = vrot.lane.b32.xlu1 %v2655_v54, %s2324_s10 }
 0x551   :  { %v677_v30 = vpop.permute.xlu0 %676  ;;  %v832_v31 = vpop.permute.xlu1 %831 }
 0x552   :  { %v765_v32 = vsel %vm167_vm2, %v764_v61, %v677_v30  ;;  %v922_v33 = vsel %vm76_vm1, %v921_v29, %v832_v31  ;;  %vm780_vm1 = vcmask 424960  }
 0x553   :  { %1097 = vperm.xlu0 %2216, %v1972_v16  }
 0x555   :  { %v680_v34 = vpop.permute.xlu0 %679  ;;  %v835_v35 = vpop.permute.xlu1 %834 }
 0x556   :  { %v767_v36 = vsel %vm766_vm11, %v765_v32, %v680_v34  ;;  %v923_v37 = vsel %vm763_vm10, %v922_v33, %v835_v35  ;;  %vm795_vm10 = vcmask 687104  }
 0x559   :  { %v683_v38 = vpop.permute.xlu0 %682  ;;  %v838_v39 = vpop.permute.xlu1 %837 }
 0x55a   :  { %v769_v40 = vsel %vm768_vm12, %v767_v36, %v683_v38  ;;  %v924_v54 = vsel %vm167_vm2, %v923_v37, %v838_v39  ;;  %vm782_vm2 = vcmask 457728  }
 0x55d   :  { %v686_v62 = vpop.permute.xlu0 %685  ;;  %v841_v41 = vpop.permute.xlu1 %840 }
 0x55e   :  { %v771_v42 = vsel %vm770_vm13, %v769_v40, %v686_v62  ;;  %v925_v21 = vsel %vm766_vm11, %v924_v54, %v841_v41  ;;  %vm797_vm11 = vcmask 719872  }
 0x561   :  { %v689_v43 = vpop.permute.xlu0 %688  ;;  %v844_v44 = vpop.permute.xlu1 %843 }
 0x562   :  { %v772_v45 = vsel %vm358_vm6, %v771_v42, %v689_v43  ;;  %v926_v46 = vsel %vm768_vm12, %v925_v21, %v844_v44  ;;  %vm801_vm12 = vcmask 785408  }
 0x565   :  { %v692_v47 = vpop.permute.xlu0 %691  ;;  %v847_v48 = vpop.permute.xlu1 %846 }
 0x566   :  { %v774_v49 = vsel %vm773_vm14, %v772_v45, %v692_v47  ;;  %v927_v50 = vsel %vm770_vm13, %v926_v46, %v847_v48  ;;  %vm803_vm13 = vcmask 818176  }
 0x569   :  { %v695_v51 = vpop.permute.xlu0 %694  ;;  %v850_v52 = vpop.permute.xlu1 %849 }
 0x56a   :  { %v776_v55 = vsel %vm775_vm15, %v774_v49, %v695_v51  ;;  %v928_v56 = vsel %vm358_vm6, %v927_v50, %v850_v52  ;;  %vm789_vm6 = vcmask 588800  }
 0x56d   :  { %v698_v57 = vpop.permute.xlu0 %697  ;;  %v853_v59 = vpop.permute.xlu1 %852 }
 0x56e   :  { %v778_v36 = vsel %vm777_vm0, %v776_v55, %v698_v57  ;;  %v929_v39 = vsel %vm773_vm14, %v928_v56, %v853_v59  ;;  %vm805_vm14 = vcmask 850944  }
 0x571   :  { %v701_v60 = vpop.permute.xlu0 %700  ;;  %v856_v63 = vpop.permute.xlu1 %855 }
 0x572   :  { %v779_v37 = vsel %vm360_vm7, %v778_v36, %v701_v60  ;;  %v930_v41 = vsel %vm775_vm15, %v929_v39, %v856_v63  ;;  %vm809_vm15 = vcmask 916480  }
 0x575   :  { %v704_v1 = vpop.permute.xlu0 %703  ;;  %v859_v2 = vpop.permute.xlu1 %858 }
 0x576   :  { %v781_v38 = vsel %vm780_vm1, %v779_v37, %v704_v1  ;;  %v931_v21 = vsel %vm777_vm0, %v930_v41, %v859_v2  ;;  %vm811_vm0 = vcmask 949248  }
 0x579   :  { %v707_v3 = vpop.permute.xlu0 %706  ;;  %v862_v4 = vpop.permute.xlu1 %861 }
 0x57a   :  { %v783_v40 = vsel %vm782_vm2, %v781_v38, %v707_v3  ;;  %v932_v44 = vsel %vm360_vm7, %v931_v21, %v862_v4  ;;  %vm799_vm7 = vcmask 752640   ;;  %v1012_v21 = vld [vmem:[#allocation3 + $0x190] sm:$0xff] }
 0x57d   :  { %v710_v5 = vpop.permute.xlu0 %709  ;;  %v865_v7 = vpop.permute.xlu1 %864 }
 0x57e   :  { %v785_v42 = vsel %vm784_vm3, %v783_v40, %v710_v5  ;;  %v933_v46 = vsel %vm780_vm1, %v932_v44, %v865_v7  ;;  %vm813_vm1 = vcmask 982016   ;;  %v1013_v44 = vld [vmem:[#allocation3 + $0x198] sm:$0xff] }
 0x581   :  { %v713_v8 = vpop.permute.xlu0 %712  ;;  %v868_v9 = vpop.permute.xlu1 %867 }
 0x582   :  { %v786_v43 = vsel %vm239_vm5, %v785_v42, %v713_v8  ;;  %v934_v50 = vsel %vm782_vm2, %v933_v46, %v868_v9  ;;  %vm815_vm2 = vcmask 1014784  }
 0x585   :  { %v716_v11 = vpop.permute.xlu0 %715  ;;  %v871_v12 = vpop.permute.xlu1 %870 }
 0x586   :  { %v788_v45 = vsel %vm787_vm4, %v786_v43, %v716_v11  ;;  %v935_v52 = vsel %vm784_vm3, %v934_v50, %v871_v12  ;;  %v1016_v43 = vld [vmem:[#allocation3 + $0x1b0] sm:$0xff] }
 0x587   :  { %v1008_v50 = vld [vmem:[#allocation3 + $0x170] sm:$0xff] }
 0x589   :  { %v719_v13 = vpop.permute.xlu0 %718  ;;  %v874_v53 = vpop.permute.xlu1 %873 }
 0x58a   :  { %v790_v47 = vsel %vm789_vm6, %v788_v45, %v719_v13  ;;  %v936_v56 = vsel %vm239_vm5, %v935_v52, %v874_v53  ;;  %vm807_vm5 = vcmask 883712   ;;  %v1017_v45 = vld [vmem:[#allocation3 + $0x1b8] sm:$0xff] }
 0x58b   :  { %v2027_v52 = vcombine.low %v1013_v44, %v1017_v45 }
 0x58d   :  { %v722_v14 = vpop.permute.xlu0 %721  ;;  %v877_v15 = vpop.permute.xlu1 %876 }
 0x58e   :  { %v792_v51 = vsel %vm791_vm8, %v790_v47, %v722_v14  ;;  %v937_v59 = vsel %vm787_vm4, %v936_v56, %v877_v15 }
 0x591   :  { %v725_v20 = vpop.permute.xlu0 %724  ;;  %v880_v22 = vpop.permute.xlu1 %879 }
 0x592   :  { %v794_v55 = vsel %vm793_vm9, %v792_v51, %v725_v20  ;;  %v938_v2 = vsel %vm789_vm6, %v937_v59, %v880_v22  ;;  %v1009_v51 = vld [vmem:[#allocation3 + $0x178] sm:$0xff]  ;;  %v1000_v59 = vld [vmem:[#allocation3 + $0x130] sm:$0xff] }
 0x595   :  { %v728_v24 = vpop.permute.xlu0 %727  ;;  %v883_v26 = vpop.permute.xlu1 %882 }
 0x596   :  { %v796_v57 = vsel %vm795_vm10, %v794_v55, %v728_v24  ;;  %v939_v4 = vsel %vm791_vm8, %v938_v2, %v883_v26  ;;  %v993_v2 = vld [vmem:[#allocation3 + $0xf8] sm:$0xff] }
 0x599   :  { %v731_v27 = vpop.permute.xlu0 %730  ;;  %v886_v28 = vpop.permute.xlu1 %885 }
 0x59a   :  { %v798_v60 = vsel %vm797_vm11, %v796_v57, %v731_v27  ;;  %v940_v7 = vsel %vm793_vm9, %v939_v4, %v886_v28  ;;  %v996_v57 = vld [vmem:[#allocation3 + $0x110] sm:$0xff] }
 0x59b   :  { %v2010_v19 = vcombine.high %v996_v57, %v1000_v59 }
 0x59d   :  { %v734_v61 = vpop.permute.xlu0 %733  ;;  %v889_v29 = vpop.permute.xlu1 %888 }
 0x59e   :  { %v800_v3 = vsel %vm799_vm7, %v798_v60, %v734_v61  ;;  %v941_v9 = vsel %vm795_vm10, %v940_v7, %v889_v29  ;;  %v997_v60 = vld [vmem:[#allocation3 + $0x118] sm:$0xff] }
 0x5a1   :  { %v737_v30 = vpop.permute.xlu0 %736  ;;  %v892_v31 = vpop.permute.xlu1 %891 }
 0x5a2   :  { %v802_v5 = vsel %vm801_vm12, %v800_v3, %v737_v30  ;;  %v942_v53 = vsel %vm797_vm11, %v941_v9, %v892_v31  ;;  %v2009_v3 = vcombine.low %v996_v57, %v1000_v59  ;;  %v984_v9 = vld [vmem:[#allocation3 + $0xb0] sm:$0xff] }
 0x5a3   :  { %v1060_v59 = vld [vmem:[#allocation3 + $0x310] sm:$0xff] }
 0x5a5   :  { %v740_v32 = vpop.permute.xlu0 %739  ;;  %v895_v33 = vpop.permute.xlu1 %894 }
 0x5a6   :  { %v804_v8 = vsel %vm803_vm13, %v802_v5, %v740_v32  ;;  %v943_v15 = vsel %vm799_vm7, %v942_v53, %v895_v33 }
 0x5a9   :  { %v743_v34 = vpop.permute.xlu0 %742  ;;  %v898_v35 = vpop.permute.xlu1 %897 }
 0x5aa   :  { %v806_v11 = vsel %vm805_vm14, %v804_v8, %v743_v34  ;;  %v944_v20 = vsel %vm801_vm12, %v943_v15, %v898_v35  ;;  %v980_v8 = vld [vmem:[#allocation3 + $0x90] sm:$0xff] }
 0x5ad   :  { %v746_v54 = vpop.permute.xlu0 %745  ;;  %v901_v62 = vpop.permute.xlu1 %900 }
 0x5ae   :  { %v808_v14 = vsel %vm807_vm5, %v806_v11, %v746_v54  ;;  %v945_v24 = vsel %vm803_vm13, %v944_v20, %v901_v62  ;;  %v981_v11 = vld [vmem:[#allocation3 + $0x98] sm:$0xff]  ;;  %v976_v20 = vld [vmem:[#allocation3 + $0x70] sm:$0xff] }
 0x5b1   :  { %v749_v48 = vpop.permute.xlu0 %748  ;;  %v904_v49 = vpop.permute.xlu1 %903 }
 0x5b2   :  { %v810_v16 = vsel %vm809_vm15, %v808_v14, %v749_v48  ;;  %v946_v61 = vsel %vm805_vm14, %v945_v24, %v904_v49  ;;  %v1004_v48 = vld [vmem:[#allocation3 + $0x150] sm:$0xff]  ;;  %v2026_v49 = vcombine.high %v1012_v21, %v1016_v43  ;;  %v1994_v14 = vcombine.high %v980_v8, %v984_v9  ;;  %v977_v24 = vld [vmem:[#allocation3 + $0x78] sm:$0xff] }
 0x5b3   :  { %v2018_v55 = vcombine.high %v1004_v48, %v1008_v50  ;;  %v2017_v17 = vcombine.low %v1004_v48, %v1008_v50  ;;  %v1068_v50 = vld [vmem:[#allocation3 + $0x350] sm:$0xff] }
 0x5b5   :  { %v752_v63 = vpop.permute.xlu0 %751  ;;  %v907_v1 = vpop.permute.xlu1 %906 }
 0x5b6   :  { %v812_v22 = vsel %vm811_vm0, %v810_v16, %v752_v63  ;;  %v947_v30 = vsel %vm807_vm5, %v946_v61, %v907_v1  ;;  %v1001_v63 = vld [vmem:[#allocation3 + $0x138] sm:$0xff]  ;;  %v972_v16 = vld [vmem:[#allocation3 + $0x50] sm:$0xff] }
 0x5b7   :  { %v2012_v23 = vcombine.high %v997_v60, %v1001_v63  ;;  %v989_v1 = vld [vmem:[#allocation3 + $0xd8] sm:$0xff]  ;;  %v2011_v4 = vcombine.low %v997_v60, %v1001_v63  ;;  %v1064_v60 = vld [vmem:[#allocation3 + $0x330] sm:$0xff] }
 0x5b8   :  { %v2004_v7 = vcombine.high %v989_v1, %v993_v2  ;;  %v2003_v53 = vcombine.low %v989_v1, %v993_v2  ;;  %v1061_v63 = vld [vmem:[#allocation3 + $0x318] sm:$0xff]  ;;  %v1056_v1 = vld [vmem:[#allocation3 + $0x2f0] sm:$0xff] }
 0x5b9   :  { %v755_v12 = vpop.permute.xlu0 %754  ;;  %v910_v13 = vpop.permute.xlu1 %909  ;;  %v1053_v2 = vld [vmem:[#allocation3 + $0x2d8] sm:$0xff] }
 0x5ba   :  { %v814_v26 = vsel %vm813_vm1, %v812_v22, %v755_v12  ;;  %v948_v31 = vsel %vm809_vm15, %v947_v30, %v910_v13  ;;  %v985_v12 = vld [vmem:[#allocation3 + $0xb8] sm:$0xff]  ;;  %v968_v30 = vld [vmem:[#allocation3 + $0x30] sm:$0xff] }
 0x5bb   :  { %v1996_v15 = vcombine.high %v981_v11, %v985_v12  ;;  %v973_v22 = vld [vmem:[#allocation3 + $0x58] sm:$0xff] }
 0x5bc   :  { %v1988_v61 = vcombine.high %v973_v22, %v977_v24 }
 0x5bd   :  { %v758_v27 = vpop.permute.xlu0 %757  ;;  %v913_v28 = vpop.permute.xlu1 %912 }
 0x5be   :  { %v816_v29 = vsel %vm815_vm2, %v814_v26, %v758_v27  ;;  %v949_v33 = vsel %vm811_vm0, %v948_v31, %v913_v28  ;;  %v1993_v26 = vcombine.low %v980_v8, %v984_v9  ;;  %v1995_v27 = vcombine.low %v981_v11, %v985_v12  ;;  %v965_v31 = vld [vmem:[#allocation3 + $0x18] sm:$0xff]  ;;  %v1044_v9 = vld [vmem:[#allocation3 + $0x290] sm:$0xff] }
 0x5bf   :  { %v820_v32 = vrot.slane %v816_v29, %v2486_v0  ;;  %v1986_v28 = vcombine.high %v972_v16, %v976_v20  ;;  %v964_v29 = vld [vmem:[#allocation3 + $0x10] sm:$0xff]  ;;  %v1045_v12 = vld [vmem:[#allocation3 + $0x298] sm:$0xff] }
 0x5c0   :  { %v1048_v11 = vld [vmem:[#allocation3 + $0x2b0] sm:$0xff] }
 0x5c1   :  { %v916_v34 = vpop.permute.xlu0 %915  ;;  %v919_v35 = vpop.permute.xlu1 %918  ;;  %v821_v38 = vmul.f32 %v820_v32, %v2622_v6  ;;  %v822_v39 = vmul.f32 %v820_v32, %v2627_v10  ;;  %v2028_v6 = vcombine.high %v1013_v44, %v1017_v45  ;;  %v1005_v10 = vld [vmem:[#allocation3 + $0x158] sm:$0xff] }
 0x5c2   :  { %v950_v36 = vsel %vm813_vm1, %v949_v33, %v916_v34  ;;  %v2020_v56 = vcombine.high %v1005_v10, %v1009_v51  ;;  %v2019_v18 = vcombine.low %v1005_v10, %v1009_v51  ;;  %v969_v32 = vld [vmem:[#allocation3 + $0x38] sm:$0xff]  ;;  %v1985_v33 = vcombine.low %v972_v16, %v976_v20  ;;  %v1072_v10 = vld [vmem:[#allocation3 + $0x370] sm:$0xff] }
 0x5c3   :  { %v951_v37 = vsel %vm815_vm2, %v950_v36, %v919_v35  ;;  %v1987_v34 = vcombine.low %v973_v22, %v977_v24  ;;  %v1978_v35 = vcombine.high %v964_v29, %v968_v30  ;;  %v1980_v36 = vcombine.high %v965_v31, %v969_v32  ;;  %v1077_v44 = vld [vmem:[#allocation3 + $0x398] sm:$0xff]  ;;  %v1036_v20 = vld [vmem:[#allocation3 + $0x250] sm:$0xff] }
 0x5c4   :  { %v955_v40 = vrot.slane %v951_v37, %v2486_v0  ;;  %v2025_v0 = vcombine.low %v1012_v21, %v1016_v43  ;;  %v1084_v37 = vld [vmem:[#allocation3 + $0x3d0] sm:$0xff]  ;;  %v1081_v45 = vld [vmem:[#allocation3 + $0x3b8] sm:$0xff] }
 0x5c5   :  { %v1076_v21 = vld [vmem:[#allocation3 + $0x390] sm:$0xff]  ;;  %v1069_v51 = vld [vmem:[#allocation3 + $0x358] sm:$0xff] }
 0x5c6   :  { %v956_v54 = vadd.f32 %v955_v40, %v821_v38  ;;  %v957_v62 = vadd.f32 %v955_v40, %v822_v39  ;;  %v1088_v38 = vld [vmem:[#allocation3 + $0x3f0] sm:$0xff]  ;;  %v1085_v39 = vld [vmem:[#allocation3 + $0x3d8] sm:$0xff] }
 0x5c7   :  { %v1089_v40 = vld [vmem:[#allocation3 + $0x3f8] sm:$0xff]  ;;  %v1080_v43 = vld [vmem:[#allocation3 + $0x3b0] sm:$0xff] }
 0x5c8   :  { %v958_v41 = vmax.f32 %v956_v54, 0.0  ;;  %v959_v42 = vmax.f32 %v957_v62, 0.0  ;;  %v1977_v54 = vcombine.low %v964_v29, %v968_v30  ;;  %v1979_v62 = vcombine.low %v965_v31, %v969_v32  ;;  %v1040_v22 = vld [vmem:[#allocation3 + $0x270] sm:$0xff]  ;;  %v1037_v24 = vld [vmem:[#allocation3 + $0x258] sm:$0xff] }
 0x5c9   :  { %v2099_v48 = vcombine.low %v1085_v39, %v1089_v40  ;;  %v1028_v30 = vld [vmem:[#allocation3 + $0x210] sm:$0xff]  ;;  %v1029_v32 = vld [vmem:[#allocation3 + $0x218] sm:$0xff] }
 0x5ca   :  { %v2833_v46 = vpack.c.bf16 %v958_v41, %v958_v41  ;;  %v961_v47 = vpack.c.bf16 %v959_v42, %v959_v42  ;;  %v2098_v41 = vcombine.high %v1084_v37, %v1088_v38  ;;  %v2100_v42 = vcombine.high %v1085_v39, %v1089_v40  ;;  %v1032_v31 = vld [vmem:[#allocation3 + $0x230] sm:$0xff] }
 0x5cc   :  { %1772 = vmatprep.mubr.bf16.mxu1 %v961_v47  ;;  %1813 = vmatprep.mubr.bf16.mxu0 %v961_v47 }
 0x5cd   :  { %1773 = vmatmul.mubr.bf16.vlgmr.msra.gmra.mxu1 %v2833_v46  ;;  %1814 = vmatmul.mubr.bf16.vlgmr.msra.gmra.mxu0 %v2833_v46 }
 0x5ce   :  { %1823 = vmatpush1.bf16.msra.mxu1 %v2033_v25  ;;  %1864 = vmatpush1.bf16.msra.mxu0 %v2035_v58  ;;  %v988_v25 = vld [vmem:[#allocation3 + $0xd0] sm:$0xff]  ;;  %v1098_v40 = vpop.permute.xlu0 %1097 }
 0x5cf   :  { %1854 = vmatprep.mubr.bf16.mxu1 %v961_v47  ;;  %1895 = vmatprep.mubr.bf16.mxu0 %v961_v47  ;;  %v992_v58 = vld [vmem:[#allocation3 + $0xf0] sm:$0xff]  ;;  %v2097_v47 = vcombine.low %v1084_v37, %v1088_v38  ;;  %v2041_v38 = vcombine.low %v1028_v30, %v1032_v31 }
 0x5d0   :  { %1824 = vmatprep.subr.bf16.mxu1 %v2026_v49  ;;  %1865 = vmatprep.subr.bf16.mxu0 %v2028_v6  ;;  %v2002_v5 = vcombine.high %v988_v25, %v992_v58  ;;  %v2001_v13 = vcombine.low %v988_v25, %v992_v58  ;;  %v2090_v49 = vcombine.high %v1076_v21, %v1080_v43  ;;  %v1052_v58 = vld [vmem:[#allocation3 + $0x2d0] sm:$0xff] }
 0x5d1   :  { %v2092_v6 = vcombine.high %v1077_v44, %v1081_v45 }
 0x5d2   :  { %1825 = vmatpush1.bf16.msra.mxu1 %v2025_v0  ;;  %1866 = vmatpush1.bf16.msra.mxu0 %v2027_v52  ;;  %v1073_v0 = vld [vmem:[#allocation3 + $0x378] sm:$0xff]  ;;  %v2089_v52 = vcombine.low %v1076_v21, %v1080_v43 }
 0x5d3   :  { %1826 = vmatprep.subr.bf16.mxu1 %v2018_v55  ;;  %1867 = vmatprep.subr.bf16.mxu0 %v2020_v56  ;;  %v2091_v55 = vcombine.low %v1077_v44, %v1081_v45  ;;  %v2082_v56 = vcombine.high %v1068_v50, %v1072_v10  ;;  %v2084_v57 = vcombine.high %v1069_v51, %v1073_v0 }
 0x5d6   :  { %1827 = vmatpush1.bf16.msra.mxu1 %v2017_v17  ;;  %1868 = vmatpush1.bf16.msra.mxu0 %v2019_v18  ;;  %v1065_v17 = vld [vmem:[#allocation3 + $0x338] sm:$0xff]  ;;  %v2081_v18 = vcombine.low %v1068_v50, %v1072_v10 }
 0x5d7   :  { %1828 = vmatprep.subr.bf16.mxu1 %v2010_v19  ;;  %1869 = vmatprep.subr.bf16.mxu0 %v2012_v23  ;;  %v2083_v19 = vcombine.low %v1069_v51, %v1073_v0  ;;  %v2074_v23 = vcombine.high %v1060_v59, %v1064_v60  ;;  %v2076_v25 = vcombine.high %v1061_v63, %v1065_v17 }
 0x5da   :  { %1829 = vmatpush1.bf16.msra.mxu1 %v2009_v3  ;;  %1870 = vmatpush1.bf16.msra.mxu0 %v2011_v4  ;;  %v1057_v3 = vld [vmem:[#allocation3 + $0x2f8] sm:$0xff]  ;;  %v2073_v4 = vcombine.low %v1060_v59, %v1064_v60 }
 0x5db   :  { %1830 = vmatprep.subr.bf16.mxu1 %v2002_v5  ;;  %1871 = vmatprep.subr.bf16.mxu0 %v2004_v7  ;;  %v2075_v5 = vcombine.low %v1061_v63, %v1065_v17  ;;  %v2066_v7 = vcombine.high %v1052_v58, %v1056_v1  ;;  %v2068_v8 = vcombine.high %v1053_v2, %v1057_v3 }
 0x5de   :  { %1831 = vmatpush1.bf16.msra.mxu1 %v2001_v13  ;;  %1872 = vmatpush1.bf16.msra.mxu0 %v2003_v53  ;;  %v1049_v13 = vld [vmem:[#allocation3 + $0x2b8] sm:$0xff]  ;;  %v2065_v53 = vcombine.low %v1052_v58, %v1056_v1 }
 0x5df   :  { %1832 = vmatprep.subr.bf16.mxu1 %v1994_v14  ;;  %1873 = vmatprep.subr.bf16.mxu0 %v1996_v15  ;;  %v2067_v14 = vcombine.low %v1053_v2, %v1057_v3  ;;  %v2058_v15 = vcombine.high %v1044_v9, %v1048_v11  ;;  %v2060_v16 = vcombine.high %v1045_v12, %v1049_v13 }
 0x5e2   :  { %1833 = vmatpush1.bf16.msra.mxu1 %v1993_v26  ;;  %1874 = vmatpush1.bf16.msra.mxu0 %v1995_v27  ;;  %v1041_v26 = vld [vmem:[#allocation3 + $0x278] sm:$0xff]  ;;  %v2057_v27 = vcombine.low %v1044_v9, %v1048_v11 }
 0x5e3   :  { %1834 = vmatprep.subr.bf16.mxu1 %v1986_v28  ;;  %1875 = vmatprep.subr.bf16.mxu0 %v1988_v61  ;;  %v2059_v28 = vcombine.low %v1045_v12, %v1049_v13  ;;  %v2050_v61 = vcombine.high %v1036_v20, %v1040_v22  ;;  %v2052_v29 = vcombine.high %v1037_v24, %v1041_v26 }
 0x5e6   :  { %1835 = vmatpush1.bf16.msra.mxu1 %v1985_v33  ;;  %1876 = vmatpush1.bf16.msra.mxu0 %v1987_v34  ;;  %v1033_v33 = vld [vmem:[#allocation3 + $0x238] sm:$0xff]  ;;  %v2049_v34 = vcombine.low %v1036_v20, %v1040_v22 }
 0x5e7   :  { %1836 = vmatprep.subr.bf16.mxu1 %v1978_v35  ;;  %1877 = vmatprep.subr.bf16.mxu0 %v1980_v36  ;;  %v2051_v35 = vcombine.low %v1037_v24, %v1041_v26  ;;  %v2042_v36 = vcombine.high %v1028_v30, %v1032_v31  ;;  %v2044_v37 = vcombine.high %v1029_v32, %v1033_v33 }
 0x5e8   :  { %v2043_v39 = vcombine.low %v1029_v32, %v1033_v33 }
 0x5ea   :  { %1837 = vmatpush1.bf16.msra.mxu1 %v1977_v54  ;;  %1878 = vmatpush1.bf16.msra.mxu0 %v1979_v62 }
 0x5eb   :  { %1838 = vmatprep.subr.bf16.mxu1 %v2098_v41  ;;  %1879 = vmatprep.subr.bf16.mxu0 %v2100_v42 }
 0x5ee   :  { %1839 = vmatpush2.bf16.msra.mxu1 %v2097_v47  ;;  %1880 = vmatpush2.bf16.msra.mxu0 %v2099_v48 }
 0x5ef   :  { %1840 = vmatprep.subr.bf16.mxu1 %v2090_v49  ;;  %1881 = vmatprep.subr.bf16.mxu0 %v2092_v6 }
 0x5f2   :  { %1841 = vmatpush2.bf16.msra.mxu1 %v2089_v52  ;;  %1882 = vmatpush2.bf16.msra.mxu0 %v2091_v55 }
 0x5f3   :  { %1842 = vmatprep.subr.bf16.mxu1 %v2082_v56  ;;  %1883 = vmatprep.subr.bf16.mxu0 %v2084_v57 }
 0x5f6   :  { %1843 = vmatpush2.bf16.msra.mxu1 %v2081_v18  ;;  %1884 = vmatpush2.bf16.msra.mxu0 %v2083_v19 }
 0x5f7   :  { %1844 = vmatprep.subr.bf16.mxu1 %v2074_v23  ;;  %1885 = vmatprep.subr.bf16.mxu0 %v2076_v25 }
 0x5fa   :  { %1845 = vmatpush2.bf16.msra.mxu1 %v2073_v4  ;;  %1886 = vmatpush2.bf16.msra.mxu0 %v2075_v5 }
 0x5fb   :  { %1846 = vmatprep.subr.bf16.mxu1 %v2066_v7  ;;  %1887 = vmatprep.subr.bf16.mxu0 %v2068_v8 }
 0x5fe   :  { %1847 = vmatpush2.bf16.msra.mxu1 %v2065_v53  ;;  %1888 = vmatpush2.bf16.msra.mxu0 %v2067_v14 }
 0x5ff   :  { %1848 = vmatprep.subr.bf16.mxu1 %v2058_v15  ;;  %1889 = vmatprep.subr.bf16.mxu0 %v2060_v16 }
 0x602   :  { %1849 = vmatpush2.bf16.msra.mxu1 %v2057_v27  ;;  %1890 = vmatpush2.bf16.msra.mxu0 %v2059_v28 }
 0x603   :  { %1850 = vmatprep.subr.bf16.mxu1 %v2050_v61  ;;  %1891 = vmatprep.subr.bf16.mxu0 %v2052_v29 }
 0x606   :  { %1851 = vmatpush2.bf16.msra.mxu1 %v2049_v34  ;;  %1892 = vmatpush2.bf16.msra.mxu0 %v2051_v35 }
 0x607   :  { %1852 = vmatprep.subr.bf16.mxu1 %v2042_v36  ;;  %1893 = vmatprep.subr.bf16.mxu0 %v2044_v37 }
 0x60a   :  { %1853 = vmatpush2.bf16.msra.mxu1 %v2041_v38  ;;  %1894 = vmatpush2.bf16.msra.mxu0 %v2043_v39 }
 0x60d   :  { %1855 = vmatmul.mubr.bf16.vlgmr.msra.gmra.mxu1 %v2833_v46  ;;  %1896 = vmatmul.mubr.bf16.vlgmr.msra.gmra.mxu0 %v2833_v46 }
 0x68d   :  { %v1774_v54 = vpop.f32.mrf.mxu1  ;;  %v1815_v62 = vpop.f32.mrf.mxu0 }
 0x68e   :  { %v1775_v41 = vadd.f32 %v1774_v54, %v1098_v40  ;;  %v1816_v42 = vadd.f32 %v1815_v62, %v1098_v40 }
 0x68f   :  { %v1776_v21 = vpop.f32.mrf.mxu1  ;;  %v1817_v43 = vpop.f32.mrf.mxu0 }
 0x690   :  { %v1904_v44 = vsub.f32 0.0, %v1775_v41  ;;  %v1906_v45 = vsub.f32 0.0, %v1816_v42  ;;  %v1777_v47 = vadd.f32 %v1776_v21, %v1098_v40  ;;  %v1818_v48 = vadd.f32 %v1817_v43, %v1098_v40 }
 0x691   :  { %v1778_v49 = vpop.f32.mrf.mxu1  ;;  %v1819_v6 = vpop.f32.mrf.mxu0 }
 0x692   :  { %v1912_v50 = vmul.f32 1.442695, %v1904_v44  ;;  %v1916_v10 = vmul.f32 1.442695, %v1906_v45  ;;  %v1905_v51 = vsub.f32 0.0, %v1777_v47  ;;  %v1907_v0 = vsub.f32 0.0, %v1818_v48 }
 0x693   :  { %v1779_v52 = vpop.f32.mrf.mxu1  ;;  %v1820_v55 = vpop.f32.mrf.mxu0 }
 0x694   :  { %2234 = vpow2.f32 %v1912_v50  ;;  %v1914_v46 = vmul.f32 1.442695, %v1905_v51  ;;  %v1918_v56 = vmul.f32 1.442695, %v1907_v0 }
 0x695   :  { %2236 = vpow2.f32 %v1916_v10 }
 0x696   :  { %2238 = vpow2.f32 %v1914_v46 }
 0x697   :  { %2240 = vpow2.f32 %v1918_v56 }
 0x6a1   :  { %v2235_v57 = vpop.eup %2234 }
 0x6a2   :  { %v2237_v59 = vpop.eup %2236  ;;  %v1928_v60 = vadd.f32 1.0, %v2235_v57 }
 0x6a3   :  { %v2239_v63 = vpop.eup %2238  ;;  %v1930_v17 = vadd.f32 1.0, %v2237_v59 }
 0x6a4   :  { %v2241_v18 = vpop.eup %2240  ;;  %2242 = vrcp.f32 %v1928_v60  ;;  %v1929_v19 = vadd.f32 1.0, %v2239_v63 }
 0x6a5   :  { %2244 = vrcp.f32 %v1930_v17  ;;  %v1931_v23 = vadd.f32 1.0, %v2241_v18 }
 0x6a6   :  { %2246 = vrcp.f32 %v1929_v19 }
 0x6a7   :  { %2248 = vrcp.f32 %v1931_v23 }
 0x6b1   :  { %v2243_v25 = vpop.eup %2242 }
 0x6b2   :  { %v2245_v58 = vpop.eup %2244  ;;  %1944 = vst [vmem:[%s2884_s15] sm:$0xff] %v2243_v25 }
 0x6b3   :  { %v2247_v1 = vpop.eup %2246  ;;  %1946 = vst [vmem:[%s2884_s15 + $0x10] sm:$0xff] %v2245_v58 }
 0x6b4   :  { %v2249_v2 = vpop.eup %2248  ;;  %1945 = vst [vmem:[%s2884_s15 + $0x8] sm:$0xff] %v2247_v1 }
 0x6b5   :  { %1947 = vst [vmem:[%s2884_s15 + $0x18] sm:$0xff] %v2249_v2 }
 0x6cd   :  { %v1856_v3 = vpop.f32.mrf.mxu1  ;;  %v1897_v4 = vpop.f32.mrf.mxu0 }
 0x6ce   :  { %v1857_v5 = vadd.f32 %v1856_v3, %v1098_v40  ;;  %v1898_v7 = vadd.f32 %v1897_v4, %v1098_v40 }
 0x6cf   :  { %v1858_v8 = vpop.f32.mrf.mxu1  ;;  %v1899_v9 = vpop.f32.mrf.mxu0 }
 0x6d0   :  { %v1908_v11 = vsub.f32 0.0, %v1857_v5  ;;  %v1910_v12 = vsub.f32 0.0, %v1898_v7  ;;  %v1859_v13 = vadd.f32 %v1858_v8, %v1098_v40  ;;  %v1900_v53 = vadd.f32 %v1899_v9, %v1098_v40 }
 0x6d1   :  { %v1860_v14 = vpop.f32.mrf.mxu1  ;;  %v1901_v15 = vpop.f32.mrf.mxu0 }
 0x6d2   :  { %v1920_v16 = vmul.f32 1.442695, %v1908_v11  ;;  %v1924_v20 = vmul.f32 1.442695, %v1910_v12  ;;  %v1909_v22 = vsub.f32 0.0, %v1859_v13  ;;  %v1911_v24 = vsub.f32 0.0, %v1900_v53 }
 0x6d3   :  { %v1861_v26 = vpop.f32.mrf.mxu1  ;;  %v1902_v27 = vpop.f32.mrf.mxu0 }
 0x6d4   :  { %2250 = vpow2.f32 %v1920_v16  ;;  %v1922_v28 = vmul.f32 1.442695, %v1909_v22  ;;  %v1926_v61 = vmul.f32 1.442695, %v1911_v24 }
 0x6d5   :  { %2252 = vpow2.f32 %v1924_v20 }
 0x6d6   :  { %2254 = vpow2.f32 %v1922_v28 }
 0x6d7   :  { %2256 = vpow2.f32 %v1926_v61 }
 0x6e1   :  { %v2251_v29 = vpop.eup %2250 }
 0x6e2   :  { %v2253_v30 = vpop.eup %2252  ;;  %v1932_v31 = vadd.f32 1.0, %v2251_v29 }
 0x6e3   :  { %v2255_v32 = vpop.eup %2254  ;;  %v1934_v33 = vadd.f32 1.0, %v2253_v30 }
 0x6e4   :  { %v2257_v34 = vpop.eup %2256  ;;  %2258 = vrcp.f32 %v1932_v31  ;;  %v1933_v35 = vadd.f32 1.0, %v2255_v32 }
 0x6e5   :  { %2260 = vrcp.f32 %v1934_v33  ;;  %v1935_v36 = vadd.f32 1.0, %v2257_v34 }
 0x6e6   :  { %2262 = vrcp.f32 %v1933_v35 }
 0x6e7   :  { %2264 = vrcp.f32 %v1935_v36 }
 0x6f1   :  { %v2259_v37 = vpop.eup %2258 }
 0x6f2   :  { %v2261_v38 = vpop.eup %2260  ;;  %1948 = vst [vmem:[%s2884_s15 + $0x20] sm:$0xff] %v2259_v37 }
 0x6f3   :  { %v2263_v39 = vpop.eup %2262  ;;  %1950 = vst [vmem:[%s2884_s15 + $0x30] sm:$0xff] %v2261_v38 }
 0x6f4   :  { %v2265_v40 = vpop.eup %2264  ;;  %1949 = vst [vmem:[%s2884_s15 + $0x28] sm:$0xff] %v2263_v39 }
 0x6f5   :  { %1951 = vst [vmem:[%s2884_s15 + $0x38] sm:$0xff] %v2265_v40 }
 0x6f6   :  { %1956 = vsyncpa [#allocation4], 1 }

</bundles_post_ra>
